<compile_context>
chip_gen: v7x
topology: tpu7x:2x2x1
jax: 0.10.0
libtpu: 0.0.40
codegen_flags: <defaults>
</compile_context>

<pallas_src>
import math

import jax
import jax.numpy as jnp
from jax.experimental import pallas as pl
from jax.experimental.pallas import tpu as pltpu

# Full-precision f32 matmuls in the plain-JAX reference so it matches the
# kernel's f32 MXU math (the reference is only used for validation).
jax.config.update("jax_default_matmul_precision", "highest")

# Small, forward-consistent sizes.
MAT = 16          # mat_size
PAR = 8           # par_size
HID = 32          # hid_size
OUT = 8           # out_size
IN_SIZE = 4 * MAT * MAT + PAR  # in_size implied by forward()

# Packed "smalls" parameter buffer layout: (48 rows, 32 lanes), f32.
_GB_ROW = 0       # rows 0..2 , lanes [0:HID)         : gcn1/2/3 biases
_B1_ROW = 3       # row 3     , lanes [0:HID)         : fc1 bias
_B2_ROW = 4       # row 4     , lanes [0:PAR)         : fc2 bias
_B3_ROW = 5       # row 5     , lanes [0:OUT)         : fc3 bias
_W2_ROW = 8       # rows 8..15, lanes [0:PAR)         : fc2 weight (PAR, PAR), x@W layout
_W3B_ROW = 8      # rows 8..15, lanes [PAR:PAR+OUT)   : fc3 weight rows HID..HID+PAR (feat part)
_W3A_ROW = 16     # rows 16..47, lanes [0:OUT)        : fc3 weight rows 0..HID (conv part)
_SMALLS_ROWS = 48

_VMEM_SPEC = pl.BlockSpec(memory_space=pltpu.MemorySpace.VMEM)


# ---------------------------------------------------------------------------
# Fused kernel: 3x GCN + fc1 + fc2 + fc3 + softmax (exp(log_softmax))
# ---------------------------------------------------------------------------
def _dggraphnet_kernel(board_ref, feat_ref, wall_ref, ws_ref, smalls_ref, out_ref):
    f32 = jnp.float32
    main = board_ref[0]                                         # (16, 16)
    S = smalls_ref[...]                                         # (48, 32)

    # One wide supp matmul:  (16,16) @ (16,96) -> (16,96) = [supp1|supp2|supp3]
    supp_all = jnp.dot(main, wall_ref[...], preferred_element_type=f32)

    # Three graph convolutions, fully unrolled; fc1 contributions are
    # accumulated flatten-free via the host-permuted weight ws[k].
    z = jnp.zeros((MAT, MAT * HID), dtype=f32)                  # (16, 512)
    for k in range(3):
        supp_k = supp_all[:, k * HID:(k + 1) * HID]             # (16, 32)
        adj_k = board_ref[1 + k]                                # (16, 16)
        conv_k = jnp.maximum(
            jnp.dot(adj_k, supp_k, preferred_element_type=f32)
            + S[_GB_ROW + k:_GB_ROW + k + 1, :],                # + gcn bias (1,32)
            0.0)                                                # (16, 32)
        z = z + jnp.dot(conv_k, ws_ref[k], preferred_element_type=f32)   # (16, 512)

    # Flatten-free fc1 reduction.
    # Keep only z[m, m*HID + h] (the "block diagonal") via an iota mask, reduce
    # over rows, then fold the 16 lane-groups of width HID with a log2 tree.
    row = jax.lax.broadcasted_iota(jnp.int32, (MAT, MAT * HID), 0)
    lane = jax.lax.broadcasted_iota(jnp.int32, (MAT, MAT * HID), 1)
    lo = row * HID
    keep = jnp.logical_and(lane >= lo, lane < lo + HID)
    zm = jnp.where(keep, z, 0.0)                                # (16, 512)
    colsum = jnp.sum(zm, axis=0, keepdims=True)                 # (1, 512)

    fold = colsum
    width = MAT * HID
    while width > HID:                                          # 512→256→128→64→32
        width //= 2
        fold = fold[:, :width] + fold[:, width:]
    conv_fc = jnp.maximum(fold + S[_B1_ROW:_B1_ROW + 1, :], 0.0)  # (1, 32)

    # fc2 on the scalar features.
    w2 = S[_W2_ROW:_W2_ROW + PAR, 0:PAR]                        # (8, 8)
    b2 = S[_B2_ROW:_B2_ROW + 1, 0:PAR]                          # (1, 8)
    feat_fc = jnp.maximum(
        jnp.dot(feat_ref[...], w2, preferred_element_type=f32) + b2, 0.0)  # (1, 8)

    # fc3 over [conv_fc, feat_fc] as a split-weight sum (no in-kernel concat),
    # then softmax (== exp(log_softmax)).
    w3a = S[_W3A_ROW:_W3A_ROW + HID, 0:OUT]                     # (32, 8)
    w3b = S[_W3B_ROW:_W3B_ROW + PAR, PAR:PAR + OUT]             # (8, 8)
    b3 = S[_B3_ROW:_B3_ROW + 1, 0:OUT]                          # (1, 8)
    logits = (jnp.dot(conv_fc, w3a, preferred_element_type=f32)
              + jnp.dot(feat_fc, w3b, preferred_element_type=f32)
              + b3)                                             # (1, 8)
    m = jnp.max(logits, axis=-1, keepdims=True)
    e = jnp.exp(logits - m)
    out_ref[...] = e / jnp.sum(e, axis=-1, keepdims=True)


@jax.jit
def dggraphnet_forward(x, params):
    # Cheap JAX-side glue: contiguous slice + reshape of the flat input.
    board = x[: 4 * MAT * MAT].reshape(4, MAT, MAT)
    feat = x[4 * MAT * MAT:].reshape(1, PAR)

    probs = pl.pallas_call(
        _dggraphnet_kernel,
        out_shape=jax.ShapeDtypeStruct((1, OUT), jnp.float32),
        in_specs=[_VMEM_SPEC] * 5,
        out_specs=_VMEM_SPEC,
    )(board, feat, params["wall"], params["ws"], params["smalls"])
    return probs.reshape(OUT)


# ---------------------------------------------------------------------------
# Parameters: same shapes / init ranges as the PyTorch module, plus host-side
# re-layouts so the fused kernel needs zero in-kernel reshapes.
# ---------------------------------------------------------------------------
def init_params(key):
    ks = jax.random.split(key, 8)
    stdv_g = 1.0 / math.sqrt(HID)
    gcn_w = jax.random.uniform(ks[0], (3, MAT, HID), jnp.float32, -stdv_g, stdv_g)
    gcn_b = jax.random.uniform(ks[1], (3, 1, HID), jnp.float32, -stdv_g, stdv_g)

    fc1_in = 3 * MAT * HID
    s1 = 1.0 / math.sqrt(fc1_in)
    w1t = jax.random.uniform(ks[2], (fc1_in, HID), jnp.float32, -s1, s1)
    b1 = jax.random.uniform(ks[3], (1, HID), jnp.float32, -s1, s1)

    s2 = 1.0 / math.sqrt(PAR)
    w2t = jax.random.uniform(ks[4], (PAR, PAR), jnp.float32, -s2, s2)
    b2 = jax.random.uniform(ks[5], (1, PAR), jnp.float32, -s2, s2)

    fc3_in = HID + PAR
    s3 = 1.0 / math.sqrt(fc3_in)
    w3t = jax.random.uniform(ks[6], (fc3_in, OUT), jnp.float32, -s3, s3)
    b3 = jax.random.uniform(ks[7], (1, OUT), jnp.float32, -s3, s3)

    return dict(gcn_w=gcn_w, gcn_b=gcn_b, w1t=w1t, b1=b1, w2t=w2t, b2=b2,
                w3t=w3t, b3=b3)


def prepare_params(p):
    """Host-side weight re-layouts for the fused kernel (keeps raw params too)."""
    out = dict(p)

    # (3, MAT, HID) -> (MAT, 3*HID): one wide supp matmul.
    out["wall"] = jnp.concatenate([p["gcn_w"][k] for k in range(3)], axis=1)

    # fc1 weight, flatten-free layout per GCN k:
    #   Ws_k[c, m*HID + h] = W1[k*MAT*HID + m*HID + c, h]
    ws = []
    for k in range(3):
        blk = p["w1t"][k * MAT * HID:(k + 1) * MAT * HID].reshape(MAT, HID, HID)
        ws.append(jnp.transpose(blk, (1, 0, 2)).reshape(HID, MAT * HID))
    out["ws"] = jnp.stack(ws)                                   # (3, HID, MAT*HID) f32

    # All small weights/biases packed into one buffer -> a single DMA.
    smalls = jnp.zeros((_SMALLS_ROWS, HID), jnp.float32)
    smalls = smalls.at[_GB_ROW:_GB_ROW + 3, :].set(p["gcn_b"][:, 0, :])
    smalls = smalls.at[_B1_ROW, :].set(p["b1"][0])
    smalls = smalls.at[_B2_ROW, 0:PAR].set(p["b2"][0])
    smalls = smalls.at[_B3_ROW, 0:OUT].set(p["b3"][0])
    smalls = smalls.at[_W2_ROW:_W2_ROW + PAR, 0:PAR].set(p["w2t"])
    smalls = smalls.at[_W3B_ROW:_W3B_ROW + PAR, PAR:PAR + OUT].set(p["w3t"][HID:])
    smalls = smalls.at[_W3A_ROW:_W3A_ROW + HID, 0:OUT].set(p["w3t"][:HID])
    out["smalls"] = smalls
    return out


# ---------------------------------------------------------------------------
# Pure-JAX reference mirroring the PyTorch forward exactly (all f32).
# ---------------------------------------------------------------------------
def reference_forward(x, p):
    board = x[: 4 * MAT * MAT].reshape(4, MAT, MAT)
    main = board[0]
    feat = x[4 * MAT * MAT:]
    convs = []
    for i in range(3):
        adj = board[1 + i]
        c = jnp.maximum(adj @ (main @ p["gcn_w"][i]) + p["gcn_b"][i], 0.0)
        convs.append(c.reshape(-1))
    conv = jnp.concatenate(convs)                               # (1536,)
    conv_fc = jnp.maximum(conv @ p["w1t"] + p["b1"][0], 0.0)    # (32,)
    feat_fc = jnp.maximum(feat @ p["w2t"] + p["b2"][0], 0.0)    # (8,)
    logits = jnp.concatenate([conv_fc, feat_fc]) @ p["w3t"] + p["b3"][0]
    return jnp.exp(jax.nn.log_softmax(logits, axis=0))


if __name__ == "__main__":
    key = jax.random.PRNGKey(0)
    k_x, k_p = jax.random.split(key)
    params = prepare_params(init_params(k_p))
    x = jax.random.uniform(k_x, (IN_SIZE,), jnp.float32, -1.0, 1.0)

    out = jax.block_until_ready(dggraphnet_forward(x, params))
    ref = jax.block_until_ready(reference_forward(x, params))

    assert out.shape == (OUT,)
    assert bool(jnp.all(jnp.isfinite(out)))
    # A wrong weight permutation / fold would be off by O(0.1); f32 roundoff is ~1e-6.
    assert jnp.allclose(out, ref, atol=5e-4, rtol=5e-3), (out, ref)
    assert jnp.allclose(jnp.sum(out), 1.0, atol=1e-5)
    print("KERNEL_OK")
</pallas_src>

<mosaic_0001>
module attributes {stable_mosaic.version = 11 : i64} {
  func.func @_dggraphnet_kernel(%arg0: memref<4x16x16xf32, #tpu.memory_space<vmem>>, %arg1: memref<1x8xf32, #tpu.memory_space<vmem>>, %arg2: memref<16x96xf32, #tpu.memory_space<vmem>>, %arg3: memref<3x32x512xf32, #tpu.memory_space<vmem>>, %arg4: memref<48x32xf32, #tpu.memory_space<vmem>>, %arg5: memref<1x8xf32, #tpu.memory_space<vmem>>) attributes {dimension_semantics = [], scalar_prefetch = 0 : i64, scratch_operands = 0 : i64, tpu.core_type = #tpu.core_type<tc>} {
    %c0 = arith.constant 0 : index
    %c0_0 = arith.constant 0 : index
    %c0_1 = arith.constant 0 : index
    %0 = vector.load %arg0[%c0, %c0_0, %c0_1] : memref<4x16x16xf32, #tpu.memory_space<vmem>>, vector<1x16x16xf32>
    %1 = vector.shape_cast %0 : vector<1x16x16xf32> to vector<16x16xf32>
    %c0_2 = arith.constant 0 : index
    %c0_3 = arith.constant 0 : index
    %2 = vector.load %arg4[%c0_2, %c0_3] : memref<48x32xf32, #tpu.memory_space<vmem>>, vector<48x32xf32>
    %c0_4 = arith.constant 0 : index
    %c0_5 = arith.constant 0 : index
    %3 = vector.load %arg2[%c0_4, %c0_5] : memref<16x96xf32, #tpu.memory_space<vmem>>, vector<16x96xf32>
    %cst = arith.constant dense<0.000000e+00> : vector<16x96xf32>
    %4 = tpu.matmul %1, %3, %cst {dimension_numbers = #tpu.dot_dimension_numbers<[1], [0], [0], [1], [0, 0, 1, 1], [], []>, precision = #tpu.contract_precision<fp32>} : vector<16x16xf32>, vector<16x96xf32>, vector<16x96xf32> -> vector<16x96xf32>
    %cst_6 = arith.constant 0.000000e+00 : f32
    %5 = vector.broadcast %cst_6 : f32 to vector<16x512xf32>
    %6 = vector.extract_strided_slice %4 {offsets = [0, 0], sizes = [16, 32], strides = [1, 1]} : vector<16x96xf32> to vector<16x32xf32>
    %c1 = arith.constant 1 : index
    %c0_7 = arith.constant 0 : index
    %c0_8 = arith.constant 0 : index
    %7 = vector.load %arg0[%c1, %c0_7, %c0_8] : memref<4x16x16xf32, #tpu.memory_space<vmem>>, vector<1x16x16xf32>
    %8 = vector.shape_cast %7 : vector<1x16x16xf32> to vector<16x16xf32>
    %cst_9 = arith.constant dense<0.000000e+00> : vector<16x32xf32>
    %9 = tpu.matmul %8, %6, %cst_9 {dimension_numbers = #tpu.dot_dimension_numbers<[1], [0], [0], [1], [0, 0, 1, 1], [], []>, precision = #tpu.contract_precision<fp32>} : vector<16x16xf32>, vector<16x32xf32>, vector<16x32xf32> -> vector<16x32xf32>
    %10 = vector.extract_strided_slice %2 {offsets = [0, 0], sizes = [1, 32], strides = [1, 1]} : vector<48x32xf32> to vector<1x32xf32>
    %11 = vector.broadcast %10 : vector<1x32xf32> to vector<16x32xf32>
    %12 = arith.addf %9, %11 : vector<16x32xf32>
    %cst_10 = arith.constant 0.000000e+00 : f32
    %13 = vector.broadcast %cst_10 : f32 to vector<16x32xf32>
    %14 = arith.maximumf %12, %13 : vector<16x32xf32>
    %c0_11 = arith.constant 0 : index
    %c0_12 = arith.constant 0 : index
    %c0_13 = arith.constant 0 : index
    %15 = vector.load %arg3[%c0_11, %c0_12, %c0_13] : memref<3x32x512xf32, #tpu.memory_space<vmem>>, vector<1x32x512xf32>
    %16 = vector.shape_cast %15 : vector<1x32x512xf32> to vector<32x512xf32>
    %cst_14 = arith.constant dense<0.000000e+00> : vector<16x512xf32>
    %17 = tpu.matmul %14, %16, %cst_14 {dimension_numbers = #tpu.dot_dimension_numbers<[1], [0], [0], [1], [0, 0, 1, 1], [], []>, precision = #tpu.contract_precision<fp32>} : vector<16x32xf32>, vector<32x512xf32>, vector<16x512xf32> -> vector<16x512xf32>
    %18 = arith.addf %5, %17 : vector<16x512xf32>
    %19 = vector.extract_strided_slice %4 {offsets = [0, 32], sizes = [16, 32], strides = [1, 1]} : vector<16x96xf32> to vector<16x32xf32>
    %c2 = arith.constant 2 : index
    %c0_15 = arith.constant 0 : index
    %c0_16 = arith.constant 0 : index
    %20 = vector.load %arg0[%c2, %c0_15, %c0_16] : memref<4x16x16xf32, #tpu.memory_space<vmem>>, vector<1x16x16xf32>
    %21 = vector.shape_cast %20 : vector<1x16x16xf32> to vector<16x16xf32>
    %cst_17 = arith.constant dense<0.000000e+00> : vector<16x32xf32>
    %22 = tpu.matmul %21, %19, %cst_17 {dimension_numbers = #tpu.dot_dimension_numbers<[1], [0], [0], [1], [0, 0, 1, 1], [], []>, precision = #tpu.contract_precision<fp32>} : vector<16x16xf32>, vector<16x32xf32>, vector<16x32xf32> -> vector<16x32xf32>
    %23 = vector.extract_strided_slice %2 {offsets = [1, 0], sizes = [1, 32], strides = [1, 1]} : vector<48x32xf32> to vector<1x32xf32>
    %24 = vector.broadcast %23 : vector<1x32xf32> to vector<16x32xf32>
    %25 = arith.addf %22, %24 : vector<16x32xf32>
    %cst_18 = arith.constant 0.000000e+00 : f32
    %26 = vector.broadcast %cst_18 : f32 to vector<16x32xf32>
    %27 = arith.maximumf %25, %26 : vector<16x32xf32>
    %c1_19 = arith.constant 1 : index
    %c0_20 = arith.constant 0 : index
    %c0_21 = arith.constant 0 : index
    %28 = vector.load %arg3[%c1_19, %c0_20, %c0_21] : memref<3x32x512xf32, #tpu.memory_space<vmem>>, vector<1x32x512xf32>
    %29 = vector.shape_cast %28 : vector<1x32x512xf32> to vector<32x512xf32>
    %cst_22 = arith.constant dense<0.000000e+00> : vector<16x512xf32>
    %30 = tpu.matmul %27, %29, %cst_22 {dimension_numbers = #tpu.dot_dimension_numbers<[1], [0], [0], [1], [0, 0, 1, 1], [], []>, precision = #tpu.contract_precision<fp32>} : vector<16x32xf32>, vector<32x512xf32>, vector<16x512xf32> -> vector<16x512xf32>
    %31 = arith.addf %18, %30 : vector<16x512xf32>
    %32 = vector.extract_strided_slice %4 {offsets = [0, 64], sizes = [16, 32], strides = [1, 1]} : vector<16x96xf32> to vector<16x32xf32>
    %c3 = arith.constant 3 : index
    %c0_23 = arith.constant 0 : index
    %c0_24 = arith.constant 0 : index
    %33 = vector.load %arg0[%c3, %c0_23, %c0_24] : memref<4x16x16xf32, #tpu.memory_space<vmem>>, vector<1x16x16xf32>
    %34 = vector.shape_cast %33 : vector<1x16x16xf32> to vector<16x16xf32>
    %cst_25 = arith.constant dense<0.000000e+00> : vector<16x32xf32>
    %35 = tpu.matmul %34, %32, %cst_25 {dimension_numbers = #tpu.dot_dimension_numbers<[1], [0], [0], [1], [0, 0, 1, 1], [], []>, precision = #tpu.contract_precision<fp32>} : vector<16x16xf32>, vector<16x32xf32>, vector<16x32xf32> -> vector<16x32xf32>
    %36 = vector.extract_strided_slice %2 {offsets = [2, 0], sizes = [1, 32], strides = [1, 1]} : vector<48x32xf32> to vector<1x32xf32>
    %37 = vector.broadcast %36 : vector<1x32xf32> to vector<16x32xf32>
    %38 = arith.addf %35, %37 : vector<16x32xf32>
    %cst_26 = arith.constant 0.000000e+00 : f32
    %39 = vector.broadcast %cst_26 : f32 to vector<16x32xf32>
    %40 = arith.maximumf %38, %39 : vector<16x32xf32>
    %c2_27 = arith.constant 2 : index
    %c0_28 = arith.constant 0 : index
    %c0_29 = arith.constant 0 : index
    %41 = vector.load %arg3[%c2_27, %c0_28, %c0_29] : memref<3x32x512xf32, #tpu.memory_space<vmem>>, vector<1x32x512xf32>
    %42 = vector.shape_cast %41 : vector<1x32x512xf32> to vector<32x512xf32>
    %cst_30 = arith.constant dense<0.000000e+00> : vector<16x512xf32>
    %43 = tpu.matmul %40, %42, %cst_30 {dimension_numbers = #tpu.dot_dimension_numbers<[1], [0], [0], [1], [0, 0, 1, 1], [], []>, precision = #tpu.contract_precision<fp32>} : vector<16x32xf32>, vector<32x512xf32>, vector<16x512xf32> -> vector<16x512xf32>
    %44 = arith.addf %31, %43 : vector<16x512xf32>
    %45 = tpu.iota {dimensions = array<i32: 0>} : vector<16x512xi32>
    %46 = tpu.iota {dimensions = array<i32: 1>} : vector<16x512xi32>
    %c32_i32 = arith.constant 32 : i32
    %47 = vector.broadcast %c32_i32 : i32 to vector<16x512xi32>
    %48 = arith.muli %45, %47 : vector<16x512xi32>
    %49 = arith.cmpi sge, %46, %48 : vector<16x512xi32>
    %c32_i32_31 = arith.constant 32 : i32
    %50 = vector.broadcast %c32_i32_31 : i32 to vector<16x512xi32>
    %51 = arith.addi %48, %50 : vector<16x512xi32>
    %52 = arith.cmpi slt, %46, %51 : vector<16x512xi32>
    %53 = arith.andi %49, %52 : vector<16x512xi1>
    %cst_32 = arith.constant 0.000000e+00 : f32
    %54 = vector.broadcast %cst_32 : f32 to vector<16x512xf32>
    %55 = arith.select %53, %44, %54 : vector<16x512xi1>, vector<16x512xf32>
    %cst_33 = arith.constant dense<0.000000e+00> : vector<512xf32>
    %56 = vector.multi_reduction <add>, %55, %cst_33 [0] : vector<16x512xf32> to vector<512xf32>
    %57 = vector.shape_cast %56 : vector<512xf32> to vector<1x512xf32>
    %58 = vector.extract_strided_slice %57 {offsets = [0, 0], sizes = [1, 256], strides = [1, 1]} : vector<1x512xf32> to vector<1x256xf32>
    %59 = vector.extract_strided_slice %57 {offsets = [0, 256], sizes = [1, 256], strides = [1, 1]} : vector<1x512xf32> to vector<1x256xf32>
    %60 = arith.addf %58, %59 : vector<1x256xf32>
    %61 = vector.extract_strided_slice %60 {offsets = [0, 0], sizes = [1, 128], strides = [1, 1]} : vector<1x256xf32> to vector<1x128xf32>
    %62 = vector.extract_strided_slice %60 {offsets = [0, 128], sizes = [1, 128], strides = [1, 1]} : vector<1x256xf32> to vector<1x128xf32>
    %63 = arith.addf %61, %62 : vector<1x128xf32>
    %64 = vector.extract_strided_slice %63 {offsets = [0, 0], sizes = [1, 64], strides = [1, 1]} : vector<1x128xf32> to vector<1x64xf32>
    %65 = vector.extract_strided_slice %63 {offsets = [0, 64], sizes = [1, 64], strides = [1, 1]} : vector<1x128xf32> to vector<1x64xf32>
    %66 = arith.addf %64, %65 : vector<1x64xf32>
    %67 = vector.extract_strided_slice %66 {offsets = [0, 0], sizes = [1, 32], strides = [1, 1]} : vector<1x64xf32> to vector<1x32xf32>
    %68 = vector.extract_strided_slice %66 {offsets = [0, 32], sizes = [1, 32], strides = [1, 1]} : vector<1x64xf32> to vector<1x32xf32>
    %69 = arith.addf %67, %68 : vector<1x32xf32>
    %70 = vector.extract_strided_slice %2 {offsets = [3, 0], sizes = [1, 32], strides = [1, 1]} : vector<48x32xf32> to vector<1x32xf32>
    %71 = arith.addf %69, %70 : vector<1x32xf32>
    %cst_34 = arith.constant 0.000000e+00 : f32
    %72 = vector.broadcast %cst_34 : f32 to vector<1x32xf32>
    %73 = arith.maximumf %71, %72 : vector<1x32xf32>
    %74 = vector.extract_strided_slice %2 {offsets = [8, 0], sizes = [8, 8], strides = [1, 1]} : vector<48x32xf32> to vector<8x8xf32>
    %75 = vector.extract_strided_slice %2 {offsets = [4, 0], sizes = [1, 8], strides = [1, 1]} : vector<48x32xf32> to vector<1x8xf32>
    %c0_35 = arith.constant 0 : index
    %c0_36 = arith.constant 0 : index
    %76 = vector.load %arg1[%c0_35, %c0_36] : memref<1x8xf32, #tpu.memory_space<vmem>>, vector<1x8xf32>
    %cst_37 = arith.constant dense<0.000000e+00> : vector<1x8xf32>
    %77 = tpu.matmul %76, %74, %cst_37 {dimension_numbers = #tpu.dot_dimension_numbers<[1], [0], [0], [1], [0, 0, 1, 1], [], []>, precision = #tpu.contract_precision<fp32>} : vector<1x8xf32>, vector<8x8xf32>, vector<1x8xf32> -> vector<1x8xf32>
    %78 = arith.addf %77, %75 : vector<1x8xf32>
    %cst_38 = arith.constant 0.000000e+00 : f32
    %79 = vector.broadcast %cst_38 : f32 to vector<1x8xf32>
    %80 = arith.maximumf %78, %79 : vector<1x8xf32>
    %81 = vector.extract_strided_slice %2 {offsets = [16, 0], sizes = [32, 8], strides = [1, 1]} : vector<48x32xf32> to vector<32x8xf32>
    %82 = vector.extract_strided_slice %2 {offsets = [8, 8], sizes = [8, 8], strides = [1, 1]} : vector<48x32xf32> to vector<8x8xf32>
    %83 = vector.extract_strided_slice %2 {offsets = [5, 0], sizes = [1, 8], strides = [1, 1]} : vector<48x32xf32> to vector<1x8xf32>
    %cst_39 = arith.constant dense<0.000000e+00> : vector<1x8xf32>
    %84 = tpu.matmul %73, %81, %cst_39 {dimension_numbers = #tpu.dot_dimension_numbers<[1], [0], [0], [1], [0, 0, 1, 1], [], []>, precision = #tpu.contract_precision<fp32>} : vector<1x32xf32>, vector<32x8xf32>, vector<1x8xf32> -> vector<1x8xf32>
    %cst_40 = arith.constant dense<0.000000e+00> : vector<1x8xf32>
    %85 = tpu.matmul %80, %82, %cst_40 {dimension_numbers = #tpu.dot_dimension_numbers<[1], [0], [0], [1], [0, 0, 1, 1], [], []>, precision = #tpu.contract_precision<fp32>} : vector<1x8xf32>, vector<8x8xf32>, vector<1x8xf32> -> vector<1x8xf32>
    %86 = arith.addf %84, %85 : vector<1x8xf32>
    %87 = arith.addf %86, %83 : vector<1x8xf32>
    %cst_41 = arith.constant dense<0xFF800000> : vector<1xf32>
    %88 = vector.multi_reduction <maximumf>, %87, %cst_41 [1] : vector<1x8xf32> to vector<1xf32>
    %89 = vector.shape_cast %88 : vector<1xf32> to vector<1x1xf32>
    %90 = vector.broadcast %89 : vector<1x1xf32> to vector<1x8xf32>
    %91 = arith.subf %87, %90 : vector<1x8xf32>
    %92 = math.exp %91 : vector<1x8xf32>
    %cst_42 = arith.constant dense<0.000000e+00> : vector<1xf32>
    %93 = vector.multi_reduction <add>, %92, %cst_42 [1] : vector<1x8xf32> to vector<1xf32>
    %94 = vector.shape_cast %93 : vector<1xf32> to vector<1x1xf32>
    %95 = vector.broadcast %94 : vector<1x1xf32> to vector<1x8xf32>
    %96 = arith.divf %92, %95 : vector<1x8xf32>
    %c0_43 = arith.constant 0 : index
    %c0_44 = arith.constant 0 : index
    %97 = vector.load %arg5[%c0_43, %c0_44] : memref<1x8xf32, #tpu.memory_space<vmem>>, vector<1x8xf32>
    tpu.vector_store %arg5[%c0_43, %c0_44], %96 {strides = array<i32>} : memref<1x8xf32, #tpu.memory_space<vmem>>, vector<1x8xf32>,
    return
  }
}

</mosaic_0001>

<bundles_post_ra>
// kernel: dggraphnet_forward.1
= control target key start
LH: loop header
LB: loop body
LE: loop exit
PB: predicated region body
PF: predicated region fallthrough
CT: control target
= control target key end

     0   :  { %10 = vsyncpa [#allocation3], 0  ;;  %s9414_s0 = inlined_call_operand.vmem [shape: f32[4,16,16], index: 0, kind: input, shape index: {}]   ;;  %s9415_s1 = inlined_call_operand.vmem [shape: f32[1,8], index: 1, kind: input, shape index: {}]   ;;  %s9416_s2 = inlined_call_operand.vmem [shape: f32[16,96], index: 2, kind: input, shape index: {}]   ;;  %s9417_s3 = inlined_call_operand.hbm [shape: f32[3,32,512], index: 3, kind: input, shape index: {}]   ;;  %s9418_s4 = inlined_call_operand.vmem [shape: f32[48,32], index: 4, kind: input, shape index: {}]   ;;  %s9419_s5 = inlined_call_operand.hbm [shape: f32[1,8], index: 5, kind: output, shape index: {}]  }
   0x1   :  { %11 = vsyncpa [#allocation4], 0  ;;  %s8390_s18 = smov [#allocation2]   ;;  %s8342_s22 = scalar_lea.hbm %s9417_s3, 6144 }
   0x2   :  { %s23_s19 = sshll.u32 %s8390_s18, 4  ;;  %p8343_p0 = scmp.ne.s32.totalorder %s9417_s3, %s8342_s22  ;;  %s24_s19 = int_to_ptr.vmem [resolvable:$true] %s23_s19 }
   0x3   :  { %p8346_p1 = scmp.lt.u32.totalorder %s8342_s22, %s9417_s3 }
   0x5   :  { %p8348_p2 = pnand %p8346_p1, %p8343_p0 }
   0x7   :  { %8351 = shalt.err (!%p8348_p2)
}
   0x8   :  { %s8352_s27 = scalar_lea.vmem %s24_s19, 6144  ;;  %p8357_p4 = scmp.lt.s32.totalorder %s24_s19, %s24_s19 }
   0x9   :  { %p8353_p3 = scmp.ne.s32.totalorder %s24_s19, %s8352_s27  ;;  %p8358_p5 = scmp.lt.s32.totalorder %s8352_s27, %s8352_s27 }
   0xb   :  { %p8359_p6 = por %p8358_p5, %p8357_p4 }
   0xd   :  { %p8360_p7 = pnand %p8359_p6, %p8353_p3 }
   0xf   :  { %8363 = shalt.err (!%p8360_p7)
}
  0x10   :  { %s8391_s28 = smov 512   ;;  %s8392_s29 = smov 32  }
  0x11   :  { %29 = dma.hbm_to_vmem [thread:$0]  %s9417_s3, 6144, %s24_s19, [#allocation3], %s8391_s28, %s8391_s28, %s8392_s29  }
  0x12   :  { %8386 = dma.done.wait [#allocation3], 6144  }
  0x13   :  { %8387 = vsyncadd [#allocation3], 4294961152  ;;  %vm45_vm0 = vcmask 130048   ;;  %v43_v0 = vld [vmem:[%s9416_s2] sm:$0xff]  ;;  %v44_v1 = vld [vmem:[%s9416_s2 + $0x8] sm:$0xff]  ;;  %s8393_s19 = smov 64  }
  0x14   :  { %v35_v2 = vld [vmem:[%s9414_s0] sm:$0xff]  ;;  %v53_v3 = vand.u32 4294901760, %v43_v0  ;;  %v56_v4 = vand.u32 4294901760, %v44_v1  ;;  %v36_v6 = vld [vmem:[%s9414_s0 + $0x8] sm:$0xff]  ;;  %v7264_v30 = vld [vmem:[%s9414_s0 + $0x10] sm:$0xff]  ;;  %s8394_s20 = smov 96  }
  0x15   :  { %v47_v5 = vsel %vm45_vm0, %v35_v2, 0  ;;  %v50_v8 = vsel %vm45_vm0, %v36_v6, 0  ;;  %v562_v31 = vsel %vm45_vm0, %v7264_v30, 0  ;;  %v7265_v37 = vld [vmem:[%s9414_s0 + $0x18] sm:$0xff]  ;;  %v7266_v39 = vld [vmem:[%s9414_s0 + $0x20] sm:$0xff]  ;;  %vm9431_vm1 = vcmask 261120  }
  0x16   :  { %v119_v7 = vand.u32 4294901760, %v47_v5  ;;  %v7714_v9 = vpack.c.bf16 %v56_v4, %v53_v3  ;;  %v129_v10 = vand.u32 4294901760, %v50_v8  ;;  %v141_v11 = vsub.f32 %v43_v0, %v53_v3  ;;  %v7267_v3 = vld [vmem:[%s9414_s0 + $0x28] sm:$0xff]  ;;  %v1613_v30 = vld [vmem:[#allocation2 + $0x80] sm:$0xff] }
  0x17   :  { %v148_v12 = vsub.f32 %v44_v1, %v56_v4  ;;  %v8460_v32 = vand.u32 4294901760, %v562_v31  ;;  %v565_v38 = vsel %vm45_vm0, %v7265_v37, 0  ;;  %v1103_v41 = vsel %vm45_vm0, %v7266_v39, 0  ;;  %v1615_v37 = vld [vmem:[#allocation2 + $0x90] sm:$0xff] }
  0x18   :  { %v120_v13 = vsub.f32 %v47_v5, %v119_v7  ;;  %7715 = vmatprep.subr.bf16.mxu0 %v7714_v9  ;;  %v130_v14 = vsub.f32 %v50_v8, %v129_v10  ;;  %v142_v15 = vand.u32 4294901760, %v141_v11  ;;  %v644_v40 = vand.u32 4294901760, %v565_v38 }
  0x19   :  { %v149_v16 = vand.u32 4294901760, %v148_v12  ;;  %7717 = vmatpush3.bf16.msra.mxu0 %v7714_v9  ;;  %v7722_v28 = vpack.c.bf16 %v148_v12, %v141_v11  ;;  %v635_v33 = vsub.f32 %v562_v31, %v8460_v32  ;;  %v8471_v42 = vand.u32 4294901760, %v1103_v41  ;;  %v1617_v31 = vld [vmem:[#allocation2 + $0xa0] sm:$0xff] }
  0x1a   :  { %v121_v17 = vand.u32 4294901760, %v120_v13  ;;  %v131_v18 = vand.u32 4294901760, %v130_v14  ;;  %v143_v19 = vsub.f32 %v141_v11, %v142_v15  ;;  %v645_v44 = vsub.f32 %v565_v38, %v644_v40 }
  0x1b   :  { %v150_v20 = vsub.f32 %v148_v12, %v149_v16  ;;  %v7730_v29 = vpack.c.bf16 %v149_v16, %v142_v15  ;;  %v636_v34 = vand.u32 4294901760, %v635_v33  ;;  %v8474_v43 = vsub.f32 %v1103_v41, %v8471_v42 }
  0x1c   :  { %v122_v21 = vsub.f32 %v120_v13, %v121_v17  ;;  %v132_v22 = vsub.f32 %v130_v14, %v131_v18  ;;  %v144_v23 = vand.u32 4294901760, %v143_v19  ;;  %v646_v47 = vand.u32 4294901760, %v645_v44 }
  0x1d   :  { %v151_v24 = vand.u32 4294901760, %v150_v20  ;;  %v637_v35 = vsub.f32 %v635_v33, %v636_v34  ;;  %v1177_v45 = vand.u32 4294901760, %v8474_v43  ;;  %v1106_v4 = vsel %vm45_vm0, %v7267_v3, 0  ;;  %v1627_v3 = vld [vmem:[#allocation2 + $0xf0] sm:$0xff] }
  0x1e   :  { %v123_v25 = vand.u32 4294901760, %v122_v21  ;;  %v133_v26 = vand.u32 4294901760, %v132_v22  ;;  %v647_v54 = vsub.f32 %v645_v44, %v646_v47  ;;  %v1185_v5 = vand.u32 4294901760, %v1106_v4 }
  0x1f   :  { %v7718_v27 = vpack.c.bf16 %v151_v24, %v144_v23  ;;  %v638_v36 = vand.u32 4294901760, %v637_v35  ;;  %v1178_v46 = vsub.f32 %v8474_v43, %v1177_v45  ;;  %v1620_v35 = vld [vmem:[#allocation2 + $0xb8] sm:$0xff]  ;;  %vm9434_vm2 = vcmask 64512  }
  0x20   :  { %7424 = vmatprep.mubr.f32.mxu0 %v123_v25  ;;  %v648_v60 = vand.u32 4294901760, %v647_v54  ;;  %v1186_v6 = vsub.f32 %v1106_v4, %v1185_v5  ;;  %v2232_v39 = vand.u32 4294901760, %v1620_v35  ;;  %vm9432_vm3 = vmmov 0  }
  0x21   :  { %7425 = vmatmul.mubr.f32.vlgmr.msra.gmra.mrb[0].mxu0 %v133_v26  ;;  %7719 = vmatprep.subr.bf16.mxu0 %v7718_v27  ;;  %v1179_v49 = vand.u32 4294901760, %v1178_v46  ;;  %v1614_v26 = vld [vmem:[#allocation2 + $0x88] sm:$0xff] }
  0x22   :  { %7721 = vmatpush3.bf16.msra.mxu0 %v7718_v27  ;;  %7431 = vmatprep.mubr.f32.mxu0 %v119_v7  ;;  %v1618_v27 = vld [vmem:[#allocation2 + $0xa8] sm:$0xff] }
  0x23   :  { %7723 = vmatprep.subr.bf16.mxu0 %v7722_v28  ;;  %7466 = vmatprep.mubr.f32.mxu1 %v638_v36 }
  0x29   :  { %7432 = vmatmul.mubr.f32.vlgmr.msra.gmra.mrb[0].mxu0 %v129_v10 }
  0x2a   :  { %7725 = vmatpush3.bf16.msra.mxu0 %v7722_v28  ;;  %7438 = vmatprep.mubr.f32.mxu0 %v120_v13  ;;  %v1636_v28 = vand.u32 4294901760, %v1614_v26 }
  0x2b   :  { %7727 = vmatprep.subr.bf16.mxu0 %v7714_v9 }
  0x2c   :  { %v8528_v4 = vsub.f32 %v1614_v26, %v1636_v28 }
  0x31   :  { %7439 = vmatmul.mubr.f32.vlgmr.msra.gmra.mrb[0].mxu0 %v130_v14 }
  0x32   :  { %7729 = vmatpush3.bf16.msra.mxu0 %v7714_v9  ;;  %7445 = vmatprep.mubr.f32.mxu0 %v121_v17 }
  0x33   :  { %7731 = vmatprep.subr.bf16.mxu0 %v7730_v29 }
  0x39   :  { %7446 = vmatmul.mubr.f32.vlgmr.msra.gmra.mrb[0].mxu0 %v131_v18 }
  0x3a   :  { %7733 = vmatpush3.bf16.msra.mxu0 %v7730_v29  ;;  %7452 = vmatprep.mubr.f32.mxu0 %v119_v7  ;;  %v1640_v29 = vand.u32 4294901760, %v1618_v27 }
  0x3b   :  { %7735 = vmatprep.subr.bf16.mxu0 %v7714_v9 }
  0x3c   :  { %v8497_v38 = vpack.c.bf16 %v1640_v29, %v1636_v28 }
  0x41   :  { %7453 = vmatmul.mubr.f32.vlgmr.msra.gmra.mrb[0].mxu0 %v129_v10 }
  0x42   :  { %7737 = vmatpush3.bf16.msra.mxu0 %v7714_v9  ;;  %7459 = vmatprep.mubr.f32.mxu0 %v119_v7  ;;  %v1187_v9 = vand.u32 4294901760, %v1186_v6 }
  0x44   :  { %v1188_v14 = vsub.f32 %v1186_v6, %v1187_v9 }
  0x46   :  { %v1189_v19 = vand.u32 4294901760, %v1188_v14  ;;  %v2242_v14 = vand.u32 4294901760, %v1627_v3 }
  0x49   :  { %7460 = vmatmul.mubr.f32.vlgmr.msra.gmra.mrb[0].mxu0 %v129_v10 }
  0x4a   :  { %7508 = vmatprep.mubr.f32.mxu0 %v1179_v49  ;;  %v1621_v49 = vld [vmem:[#allocation2 + $0xc0] sm:$0xff] }
 0x11c   :  { %v7461_v48 = vpop.f32.mrb[0].mxu0 }
 0x11d   :  { %v571_v50 = vand.u32 4294901760, %v7461_v48  ;;  %v544_v51 = vpop.f32.mrb[1].mxu0 }
 0x11e   :  { %v568_v52 = vand.u32 4294901760, %v544_v51  ;;  %4017 = vrot.lane.b32.xlu1 %v544_v51, %s8393_s19  ;;  %1096 = vrot.lane.b32.xlu0 %v544_v51, %s8394_s20 }
 0x11f   :  { %v663_v53 = vsub.f32 %v7461_v48, %v571_v50 }
 0x120   :  { %v7738_v55 = vpack.c.bf16 %v571_v50, %v568_v52  ;;  %v656_v56 = vsub.f32 %v544_v51, %v568_v52  ;;  %v1625_v50 = vld [vmem:[#allocation2 + $0xe0] sm:$0xff] }
 0x121   :  { %v664_v57 = vand.u32 4294901760, %v663_v53 }
 0x122   :  { %4019 = vrot.lane.b32.xlu1 %v7461_v48, %s8393_s19  ;;  %1098 = vrot.lane.b32.xlu0 %v7461_v48, %s8394_s20  ;;  %v657_v58 = vand.u32 4294901760, %v656_v56  ;;  %v7746_v59 = vpack.c.bf16 %v663_v53, %v656_v56  ;;  %v2230_v48 = vand.u32 4294901760, %v1615_v37 }
 0x123   :  { %7739 = vmatprep.subr.bf16.mxu1 %v7738_v55  ;;  %v665_v61 = vsub.f32 %v663_v53, %v664_v57 }
 0x124   :  { %7741 = vmatpush3.bf16.msra.mxu1 %v7738_v55  ;;  %v658_v62 = vsub.f32 %v656_v56, %v657_v58  ;;  %v7754_v63 = vpack.c.bf16 %v664_v57, %v657_v58  ;;  %v1646_v56 = vand.u32 4294901760, %v1621_v49  ;;  %v1650_v57 = vand.u32 4294901760, %v1625_v50  ;;  %v1624_v58 = vld [vmem:[#allocation2 + $0xd8] sm:$0xff] }
 0x125   :  { %v666_v0 = vand.u32 4294901760, %v665_v61 }
 0x126   :  { %v659_v1 = vand.u32 4294901760, %v658_v62  ;;  %v1628_v62 = vld [vmem:[#allocation2 + $0xf8] sm:$0xff] }
 0x127   :  { %7467 = vmatmul.mubr.f32.vlgmr.msra.gmra.mrb[0].mxu1 %v648_v60 }
 0x128   :  { %v7742_v2 = vpack.c.bf16 %v666_v0, %v659_v1  ;;  %7473 = vmatprep.mubr.f32.mxu1 %v8460_v32 }
 0x12a   :  { %7743 = vmatprep.subr.bf16.mxu1 %v7742_v2 }
 0x12b   :  { %7745 = vmatpush3.bf16.msra.mxu1 %v7742_v2  ;;  %v8526_v2 = vpack.c.bf16 %v1650_v57, %v1646_v56 }
 0x12c   :  { %7747 = vmatprep.subr.bf16.mxu1 %v7746_v59 }
 0x12f   :  { %7474 = vmatmul.mubr.f32.vlgmr.msra.gmra.mrb[0].mxu1 %v644_v40 }
 0x130   :  { %7749 = vmatpush3.bf16.msra.mxu1 %v7746_v59  ;;  %7480 = vmatprep.mubr.f32.mxu1 %v635_v33  ;;  %v1638_v33 = vand.u32 4294901760, %v1613_v30 }
 0x131   :  { %7751 = vmatprep.subr.bf16.mxu1 %v7738_v55 }
 0x137   :  { %7481 = vmatmul.mubr.f32.vlgmr.msra.gmra.mrb[0].mxu1 %v645_v44  ;;  %v1622_v44 = vld [vmem:[#allocation2 + $0xc8] sm:$0xff] }
 0x138   :  { %7753 = vmatpush3.bf16.msra.mxu1 %v7738_v55  ;;  %7487 = vmatprep.mubr.f32.mxu1 %v636_v34  ;;  %v1642_v34 = vand.u32 4294901760, %v1617_v31  ;;  %v1644_v53 = vand.u32 4294901760, %v1622_v44 }
 0x139   :  { %7755 = vmatprep.subr.bf16.mxu1 %v7754_v63 }
 0x13a   :  { %v8499_v41 = vpack.c.bf16 %v1642_v34, %v1638_v33  ;;  %v8522_v0 = vsub.f32 %v1622_v44, %v1644_v53 }
 0x13f   :  { %7488 = vmatmul.mubr.f32.vlgmr.msra.gmra.mrb[0].mxu1 %v646_v47 }
 0x140   :  { %7757 = vmatpush3.bf16.msra.mxu1 %v7754_v63  ;;  %7494 = vmatprep.mubr.f32.mxu1 %v8460_v32  ;;  %v1623_v63 = vld [vmem:[#allocation2 + $0xd0] sm:$0xff] }
 0x141   :  { %7759 = vmatprep.subr.bf16.mxu1 %v7738_v55 }
 0x147   :  { %7495 = vmatmul.mubr.f32.vlgmr.msra.gmra.mrb[0].mxu1 %v644_v40 }
 0x148   :  { %7761 = vmatpush3.bf16.msra.mxu1 %v7738_v55  ;;  %7501 = vmatprep.mubr.f32.mxu1 %v8460_v32  ;;  %v1616_v32 = vld [vmem:[#allocation2 + $0x98] sm:$0xff]  ;;  %v8514_v55 = vsub.f32 %v1615_v37, %v2230_v48 }
 0x149   :  { %v2228_v36 = vand.u32 4294901760, %v1616_v32  ;;  %7787 = vmatprep.subr.bf16.mxu1 %v8497_v38 }
 0x14a   :  { %v2331_v28 = vand.u32 4294901760, %v8514_v55 }
 0x14b   :  { %v8508_v47 = vpack.c.bf16 %v2232_v39, %v2228_v36 }
 0x14f   :  { %7502 = vmatmul.mubr.f32.vlgmr.msra.gmra.mrb[0].mxu1 %v644_v40  ;;  %v1619_v40 = vld [vmem:[#allocation2 + $0xb0] sm:$0xff] }
 0x150   :  { %7789 = vmatpush1.bf16.msra.mxu1 %v8499_v41  ;;  %v2234_v52 = vand.u32 4294901760, %v1619_v40 }
 0x152   :  { %v8516_v59 = vpack.c.bf16 %v2234_v52, %v2230_v48  ;;  %v8518_v60 = vsub.f32 %v1619_v40, %v2234_v52 }
 0x154   :  { %v2343_v48 = vand.u32 4294901760, %v8518_v60 }
 0x190   :  { %v1097_v7 = vpop.permute.xlu0 %1096 }
 0x191   :  { %v1109_v8 = vand.u32 4294901760, %v1097_v7 }
 0x193   :  { %v1197_v10 = vsub.f32 %v1097_v7, %v1109_v8  ;;  %v2236_v7 = vand.u32 4294901760, %v1624_v58 }
 0x194   :  { %v1099_v11 = vpop.permute.xlu0 %1098 }
 0x195   :  { %v1112_v12 = vand.u32 4294901760, %v1099_v11  ;;  %v1198_v13 = vand.u32 4294901760, %v1197_v10 }
 0x197   :  { %v7762_v15 = vpack.c.bf16 %v1112_v12, %v1109_v8  ;;  %v1204_v16 = vsub.f32 %v1099_v11, %v1112_v12  ;;  %v1199_v17 = vsub.f32 %v1197_v10, %v1198_v13  ;;  %v8536_v8 = vsub.f32 %v1618_v27, %v1640_v29 }
 0x198   :  { %v2238_v11 = vand.u32 4294901760, %v1623_v63  ;;  %v8541_v12 = vsub.f32 %v1620_v35, %v2232_v39  ;;  %v2332_v35 = vsub.f32 %v8514_v55, %v2331_v28 }
 0x199   :  { %v1205_v18 = vand.u32 4294901760, %v1204_v16  ;;  %7763 = vmatprep.subr.bf16.mxu0 %v7762_v15  ;;  %v1200_v21 = vand.u32 4294901760, %v1199_v17  ;;  %v7770_v24 = vpack.c.bf16 %v1204_v16, %v1197_v10  ;;  %v2240_v10 = vand.u32 4294901760, %v1628_v62 }
 0x19a   :  { %7765 = vmatpush3.bf16.msra.mxu0 %v7762_v15  ;;  %v8549_v17 = vsub.f32 %v1623_v63, %v2238_v11  ;;  %v2337_v27 = vand.u32 4294901760, %v8541_v12 }
 0x19b   :  { %v1206_v20 = vsub.f32 %v1204_v16, %v1205_v18  ;;  %v7778_v25 = vpack.c.bf16 %v1205_v18, %v1198_v13  ;;  %v8543_v13 = vsub.f32 %v1624_v58, %v2236_v7  ;;  %v8547_v16 = vsub.f32 %v1628_v62, %v2240_v10 }
 0x19c   :  { %v8395_v18 = vmov 0.0  }
 0x19d   :  { %7509 = vmatmul.mubr.f32.vlgmr.msra.gmra.mrb[2].mxu0 %v1189_v19  ;;  %v1207_v22 = vand.u32 4294901760, %v1206_v20  ;;  %1708 = vmatprep.mubr.f32.mxu1 %v8395_v18  ;;  %v8552_v19 = vpack.c.bf16 %v2242_v14, %v2238_v11  ;;  %v8554_v20 = vsub.f32 %v1627_v3, %v2242_v14 }
 0x19e   :  { %7515 = vmatprep.mubr.f32.mxu0 %v8471_v42 }
 0x19f   :  { %v7766_v23 = vpack.c.bf16 %v1207_v22, %v1200_v21  ;;  %v1733_v21 = vand.u32 4294901760, %v8528_v4  ;;  %v1745_v22 = vand.u32 4294901760, %v8536_v8 }
 0x1a1   :  { %7767 = vmatprep.subr.bf16.mxu0 %v7766_v23  ;;  %v1734_v26 = vsub.f32 %v8528_v4, %v1733_v21  ;;  %v1746_v29 = vsub.f32 %v8536_v8, %v1745_v22 }
 0x1a2   :  { %7769 = vmatpush3.bf16.msra.mxu0 %v7766_v23 }
 0x1a3   :  { %7771 = vmatprep.subr.bf16.mxu0 %v7770_v24 }
 0x1a5   :  { %7516 = vmatmul.mubr.f32.vlgmr.msra.gmra.mrb[2].mxu0 %v1185_v5 }
 0x1a6   :  { %7773 = vmatpush3.bf16.msra.mxu0 %v7770_v24  ;;  %7522 = vmatprep.mubr.f32.mxu0 %v8474_v43  ;;  %v8503_v43 = vsub.f32 %v1617_v31, %v1642_v34  ;;  %v2338_v34 = vsub.f32 %v8541_v12, %v2337_v27 }
 0x1a7   :  { %7775 = vmatprep.subr.bf16.mxu0 %v7762_v15 }
 0x1a8   :  { %v1751_v24 = vand.u32 4294901760, %v8503_v43  ;;  %v2339_v44 = vand.u32 4294901760, %v2338_v34 }
 0x1aa   :  { %v1752_v31 = vsub.f32 %v8503_v43, %v1751_v24 }
 0x1ac   :  { %v1753_v39 = vand.u32 4294901760, %v1752_v31 }
 0x1ad   :  { %7523 = vmatmul.mubr.f32.vlgmr.msra.gmra.mrb[2].mxu0 %v1186_v6  ;;  %v8534_v6 = vsub.f32 %v1625_v50, %v1650_v57  ;;  %v2344_v57 = vsub.f32 %v8518_v60, %v2343_v48 }
 0x1ae   :  { %7777 = vmatpush3.bf16.msra.mxu0 %v7762_v15  ;;  %7529 = vmatprep.mubr.f32.mxu0 %v1177_v45  ;;  %v1626_v45 = vld [vmem:[#allocation2 + $0xe8] sm:$0xff] }
 0x1af   :  { %7779 = vmatprep.subr.bf16.mxu0 %v7778_v25  ;;  %v1648_v54 = vand.u32 4294901760, %v1626_v45  ;;  %v1775_v62 = vand.u32 4294901760, %v8534_v6  ;;  %v2345_v11 = vand.u32 4294901760, %v2344_v57 }
 0x1b1   :  { %v8520_v61 = vpack.c.bf16 %v1648_v54, %v1644_v53  ;;  %v8524_v1 = vsub.f32 %v1626_v45, %v1648_v54  ;;  %v2333_v45 = vand.u32 4294901760, %v2332_v35 }
 0x1b3   :  { %7791 = vmatprep.subr.bf16.mxu1 %v8520_v61  ;;  %v1769_v53 = vand.u32 4294901760, %v8524_v1  ;;  %v7844_v34 = vpack.c.bf16 %v2345_v11, %v2333_v45  ;;  %v7852_v11 = vpack.c.bf16 %v8518_v60, %v8514_v55  ;;  %v1072_v55 = vld [vmem:[#allocation2 + $0x8] sm:$0xff] }
 0x1b4   :  { %7793 = vmatpush1.bf16.msra.mxu1 %v8526_v2  ;;  %v1076_v60 = vld [vmem:[#allocation2 + $0x28] sm:$0xff] }
 0x1b5   :  { %7530 = vmatmul.mubr.f32.vlgmr.msra.gmra.mrb[2].mxu0 %v1187_v9  ;;  %v8538_v9 = vsub.f32 %v1616_v32, %v2228_v36  ;;  %v1747_v36 = vand.u32 4294901760, %v1746_v29  ;;  %v1770_v63 = vsub.f32 %v8524_v1, %v1769_v53  ;;  %v2355_v29 = vand.u32 4294901760, %v8549_v17 }
 0x1b6   :  { %7781 = vmatpush3.bf16.msra.mxu0 %v7778_v25  ;;  %7536 = vmatprep.mubr.f32.mxu0 %v8471_v42 }
 0x1b7   :  { %7783 = vmatprep.subr.bf16.mxu0 %v7762_v15  ;;  %v2325_v25 = vand.u32 4294901760, %v8538_v9  ;;  %v7850_v45 = vpack.c.bf16 %v8541_v12, %v8538_v9  ;;  %v8623_v12 = vpack.c.bf16 %v1745_v22, %v1733_v21  ;;  %v9420_v21 = vlaneseq }
 0x1b9   :  { %v2326_v32 = vsub.f32 %v8538_v9, %v2325_v25  ;;  %v8646_v22 = vshrl.u32 %v9420_v21, 7  ;;  %v37_v9 = vld [vmem:[%s9418_s4] sm:$0xff] }
 0x1bb   :  { %v2327_v40 = vand.u32 4294901760, %v2326_v32 }
 0x1bd   :  { %7537 = vmatmul.mubr.f32.vlgmr.msra.gmra.mrb[2].mxu0 %v1185_v5 }
 0x1be   :  { %7785 = vmatpush3.bf16.msra.mxu0 %v7762_v15  ;;  %7543 = vmatprep.mubr.f32.mxu0 %v8471_v42  ;;  %v8501_v42 = vsub.f32 %v1613_v30, %v1638_v33  ;;  %v8545_v15 = vpack.c.bf16 %v2240_v10, %v2236_v7  ;;  %v1735_v33 = vand.u32 4294901760, %v1734_v26  ;;  %v2349_v7 = vand.u32 4294901760, %v8543_v13 }
 0x1bf   :  { %7835 = vmatprep.subr.bf16.mxu0 %v8508_v47  ;;  %v2361_v10 = vand.u32 4294901760, %v8547_v16  ;;  %v1776_v26 = vsub.f32 %v8534_v6, %v1775_v62 }
 0x1c0   :  { %v1739_v23 = vand.u32 4294901760, %v8501_v42  ;;  %v7794_v50 = vpack.c.bf16 %v1747_v36, %v1735_v33  ;;  %v2350_v32 = vsub.f32 %v8543_v13, %v2349_v7  ;;  %v2356_v36 = vsub.f32 %v8549_v17, %v2355_v29 }
 0x1c1   :  { %v2362_v33 = vsub.f32 %v8547_v16, %v2361_v10  ;;  %v1777_v35 = vand.u32 4294901760, %v1776_v26 }
 0x1c2   :  { %v1740_v30 = vsub.f32 %v8501_v42, %v1739_v23  ;;  %7795 = vmatprep.subr.bf16.mxu1 %v7794_v50  ;;  %v7802_v50 = vpack.c.bf16 %v8536_v8, %v8528_v4  ;;  %v2357_v57 = vand.u32 4294901760, %v2356_v36  ;;  %v8633_v36 = vpack.c.bf16 %v2337_v27, %v2325_v25 }
 0x1c3   :  { %v8641_v4 = vpack.c.bf16 %v2361_v10, %v2349_v7 }
 0x1c4   :  { %v1741_v37 = vand.u32 4294901760, %v1740_v30  ;;  %v1771_v30 = vand.u32 4294901760, %v1770_v63  ;;  %v7804_v63 = vpack.c.bf16 %v8503_v43, %v8501_v42 }
 0x1c5   :  { %7544 = vmatmul.mubr.f32.vlgmr.msra.gmra.mrb[2].mxu0 %v1185_v5  ;;  %v8532_v5 = vsub.f32 %v1621_v49, %v1646_v56  ;;  %v1757_v49 = vand.u32 4294901760, %v8522_v0  ;;  %v7842_v56 = vpack.c.bf16 %v2339_v44, %v2327_v40  ;;  %v2351_v40 = vand.u32 4294901760, %v2350_v32 }
 0x1c6   :  { %7837 = vmatpush1.bf16.msra.mxu0 %v8516_v59  ;;  %2300 = vmatprep.mubr.f32.mxu0 %v8395_v18  ;;  %v8585_v52 = vpack.c.bf16 %v1753_v39, %v1741_v37  ;;  %v2367_v37 = vand.u32 4294901760, %v8554_v20  ;;  %v2363_v44 = vand.u32 4294901760, %v2362_v33  ;;  %v7856_v32 = vpack.c.bf16 %v8554_v20, %v8549_v17  ;;  %v1074_v17 = vld [vmem:[#allocation2 + $0x18] sm:$0xff] }
 0x1c7   :  { %7839 = vmatprep.subr.bf16.mxu0 %v8545_v15  ;;  %v1763_v54 = vand.u32 4294901760, %v8532_v5  ;;  %v1758_v58 = vsub.f32 %v8522_v0, %v1757_v49 }
 0x1c8   :  { %v8643_v8 = vpack.c.bf16 %v2367_v37, %v2355_v29 }
 0x1c9   :  { %v1764_v3 = vsub.f32 %v8532_v5, %v1763_v54  ;;  %v1759_v14 = vand.u32 4294901760, %v1758_v58  ;;  %v2368_v58 = vsub.f32 %v8554_v20, %v2367_v37  ;;  %v559_v37 = vsub.s32 0, %v8646_v22  ;;  %v1078_v20 = vld [vmem:[#allocation2 + $0x38] sm:$0xff] }
 0x1ca   :  { %7841 = vmatpush1.bf16.msra.mxu0 %v8552_v19 }
 0x1cb   :  { %7843 = vmatprep.subr.bf16.mxu0 %v7842_v56  ;;  %v1765_v31 = vand.u32 4294901760, %v1764_v3  ;;  %v7798_v39 = vpack.c.bf16 %v1771_v30, %v1759_v14  ;;  %v7846_v3 = vpack.c.bf16 %v2363_v44, %v2351_v40  ;;  %v7806_v14 = vpack.c.bf16 %v8524_v1, %v8522_v0  ;;  %v1071_v0 = vld [vmem:[#allocation2] sm:$0xff] }
 0x1cc   :  { %v2369_v26 = vand.u32 4294901760, %v2368_v58  ;;  %v7808_v30 = vpack.c.bf16 %v8534_v6, %v8532_v5  ;;  %v8635_v40 = vpack.c.bf16 %v2343_v48, %v2331_v28  ;;  %v8637_v44 = vpack.c.bf16 %v1769_v53, %v1757_v49  ;;  %v1075_v1 = vld [vmem:[#allocation2 + $0x20] sm:$0xff] }
 0x1cd   :  { %v7800_v56 = vpack.c.bf16 %v1777_v35, %v1765_v31  ;;  %v7854_v31 = vpack.c.bf16 %v8547_v16, %v8543_v13  ;;  %v8629_v35 = vpack.c.bf16 %v1751_v24, %v1739_v23  ;;  %v1092_v23 = vsub.s32 1, %v8646_v22 }
 0x1ce   :  { %v7848_v33 = vpack.c.bf16 %v2369_v26, %v2357_v57  ;;  %v8639_v57 = vpack.c.bf16 %v1775_v62, %v1763_v54  ;;  %v2826_v13 = vand.u32 4294901760, %v1072_v55  ;;  %v2830_v16 = vand.u32 4294901760, %v1076_v60 }
 0x1cf   :  { %v1093_v24 = vrot.slane %v37_v9, %v1092_v23 }
 0x222   :  { %v8505_v46 = vpop.f32.mrb[0].mxu1 }
 0x223   :  { %v8510_v51 = vpop.f32.mrb[1].mxu1 }
 0x298   :  { %v7545_v25 = vpop.f32.mrb[2].mxu0 }
 0x299   :  { %v8136_v27 = vadd.f32 %v7545_v25, %v1093_v24  ;;  %v1600_v28 = vpop.f32.mrb[3].mxu0 }
 0x29a   :  { %v8137_v48 = vadd.f32 %v1600_v28, %v1093_v24  ;;  %v560_v24 = vrot.slane %v37_v9, %v559_v37  ;;  %v8737_v9 = vpack.c.bf16 %v2830_v16, %v2826_v13  ;;  %v1082_v37 = vld [vmem:[#allocation2 + $0x58] sm:$0xff] }
 0x29b   :  { %v1611_v49 = vmax.f32 %v8136_v27, 0.0 }
 0x29c   :  { %v1610_v53 = vmax.f32 %v8137_v48, 0.0  ;;  %v8135_v48 = vadd.f32 %v8510_v51, %v560_v24  ;;  %v8134_v51 = vadd.f32 %v8505_v46, %v560_v24 }
 0x29d   :  { %v1634_v54 = vsel %vm9431_vm1, %v1611_v49, 0 }
 0x29e   :  { %v8653_v62 = vand.u32 4294901760, %v1634_v54  ;;  %v1631_v7 = vsel %vm9431_vm1, %v1610_v53, 0  ;;  %v1069_v53 = vmax.f32 %v8135_v48, 0.0  ;;  %v1070_v46 = vmax.f32 %v8134_v51, 0.0  ;;  %v1085_v51 = vld [vmem:[#allocation2 + $0x70] sm:$0xff] }
 0x29f   :  { %v8656_v10 = vand.u32 4294901760, %v1631_v7 }
 0x2a0   :  { %v8659_v29 = vsub.f32 %v1634_v54, %v8653_v62  ;;  %v2824_v43 = vsel %vm9431_vm1, %v1070_v46, 0  ;;  %v8739_v54 = vsub.f32 %v1072_v55, %v2826_v13  ;;  %v3432_v13 = vand.u32 4294901760, %v1085_v51 }
 0x2a1   :  { %v1710_v58 = vsub.f32 %v1631_v7, %v8656_v10  ;;  %v8715_v5 = vand.u32 4294901760, %v2824_v43 }
 0x2a2   :  { %v8666_v23 = vand.u32 4294901760, %v8659_v29 }
 0x2a3   :  { %v8663_v26 = vand.u32 4294901760, %v1710_v58 }
 0x2a4   :  { %v1723_v28 = vsub.f32 %v8659_v29, %v8666_v23 }
 0x2a5   :  { %v1712_v25 = vsub.f32 %v1710_v58, %v8663_v26 }
 0x2a6   :  { %v1724_v49 = vand.u32 4294901760, %v1723_v28 }
 0x2a7   :  { %v1713_v27 = vand.u32 4294901760, %v1712_v25 }
 0x2a9   :  { %1714 = vmatmul.mubr.f32.vlgmr.msra.gmra.mrb[2].mxu1 %v1713_v27  ;;  %2306 = vmatmul.mubr.f32.vlgmr.msra.gmra.mrb[4].mxu0 %v1713_v27  ;;  %v1086_v27 = vld [vmem:[#allocation2 + $0x78] sm:$0xff] }
 0x2aa   :  { %7797 = vmatpush1.bf16.msra.mxu1 %v8585_v52  ;;  %7845 = vmatpush1.bf16.msra.mxu0 %v7844_v34  ;;  %v2821_v52 = vsel %vm9431_vm1, %v1069_v53, 0  ;;  %v1081_v53 = vld [vmem:[#allocation2 + $0x50] sm:$0xff] }
 0x2ab   :  { %1719 = vmatprep.mubr.f32.mxu1 %v8395_v18  ;;  %7799 = vmatprep.subr.bf16.mxu1 %v7798_v39  ;;  %v8687_v34 = vand.u32 4294901760, %v2821_v52  ;;  %v2828_v39 = vand.u32 4294901760, %v1071_v0 }
 0x2ac   :  { %2311 = vmatprep.mubr.f32.mxu0 %v8395_v18  ;;  %7847 = vmatprep.subr.bf16.mxu0 %v7846_v3  ;;  %v1080_v3 = vld [vmem:[#allocation2 + $0x48] sm:$0xff] }
 0x2ad   :  { %1725 = vmatmul.mubr.f32.gmra.mrb[4].mxu1 %v1724_v49  ;;  %2317 = vmatmul.mubr.f32.gmra.mrb[6].mxu0 %v1724_v49  ;;  %v8706_v42 = vsub.f32 %v2821_v52, %v8687_v34  ;;  %v2834_v24 = vand.u32 4294901760, %v1080_v3 }
 0x2ae   :  { %7801 = vmatpush1.bf16.msra.mxu1 %v7800_v56  ;;  %7849 = vmatpush1.bf16.msra.mxu0 %v7848_v33  ;;  %v1073_v56 = vld [vmem:[#allocation2 + $0x10] sm:$0xff]  ;;  %v1083_v33 = vld [vmem:[#allocation2 + $0x60] sm:$0xff] }
 0x2af   :  { %1835 = vmatprep.mubr.f32.mxu1 %v8395_v18  ;;  %7803 = vmatprep.subr.bf16.mxu1 %v7802_v50  ;;  %v8718_v6 = vand.u32 4294901760, %v8706_v42  ;;  %v2832_v50 = vand.u32 4294901760, %v1075_v1  ;;  %v3420_v7 = vand.u32 4294901760, %v1073_v56  ;;  %v2840_v49 = vand.u32 4294901760, %v1083_v33 }
 0x2b0   :  { %2427 = vmatprep.mubr.f32.mxu0 %v8395_v18  ;;  %7851 = vmatprep.subr.bf16.mxu0 %v7850_v45  ;;  %v1084_v45 = vld [vmem:[#allocation2 + $0x68] sm:$0xff] }
 0x2b1   :  { %1837 = vmatmul.mubr.f32.vlgmr.msra.gmra.mrb[2].mxu1 %v8656_v10  ;;  %2429 = vmatmul.mubr.f32.vlgmr.msra.gmra.mrb[4].mxu0 %v8656_v10  ;;  %v2838_v25 = vand.u32 4294901760, %v1084_v45  ;;  %v8751_v28 = vsub.f32 %v1075_v1, %v2832_v50  ;;  %v3428_v1 = vand.u32 4294901760, %v1081_v53 }
 0x2b2   :  { %7805 = vmatpush1.bf16.msra.mxu1 %v7804_v63  ;;  %7853 = vmatpush1.bf16.msra.mxu0 %v7852_v11  ;;  %v1077_v63 = vld [vmem:[#allocation2 + $0x30] sm:$0xff]  ;;  %v8729_v11 = vsub.f32 %v2824_v43, %v8715_v5  ;;  %v8765_v43 = vsub.f32 %v1073_v56, %v3420_v7 }
 0x2b3   :  { %1842 = vmatprep.mubr.f32.mxu1 %v8395_v18  ;;  %7807 = vmatprep.subr.bf16.mxu1 %v7806_v14  ;;  %v2902_v14 = vsub.f32 %v8706_v42, %v8718_v6 }
 0x2b4   :  { %2434 = vmatprep.mubr.f32.mxu0 %v8395_v18  ;;  %7855 = vmatprep.subr.bf16.mxu0 %v7854_v31  ;;  %v3422_v31 = vand.u32 4294901760, %v1078_v20 }
 0x2b5   :  { %1844 = vmatmul.mubr.f32.gmra.mrb[4].mxu1 %v8653_v62  ;;  %2436 = vmatmul.mubr.f32.gmra.mrb[6].mxu0 %v8653_v62 }
 0x2b6   :  { %7809 = vmatpush1.bf16.msra.mxu1 %v7808_v30  ;;  %7857 = vmatpush1.bf16.msra.mxu0 %v7856_v32  ;;  %v3418_v30 = vand.u32 4294901760, %v1074_v17  ;;  %v1079_v32 = vld [vmem:[#allocation2 + $0x40] sm:$0xff]  ;;  %v8759_v46 = vsub.f32 %v1078_v20, %v3422_v31  ;;  %v2923_v20 = vand.u32 4294901760, %v8739_v54 }
 0x2b7   :  { %1930 = vmatprep.mubr.f32.mxu1 %v8395_v18  ;;  %7811 = vmatprep.subr.bf16.mxu1 %v8497_v38  ;;  %v2836_v48 = vand.u32 4294901760, %v1079_v32 }
 0x2b8   :  { %2522 = vmatprep.mubr.f32.mxu0 %v8395_v18  ;;  %7859 = vmatprep.subr.bf16.mxu0 %v8508_v47  ;;  %v8757_v52 = vsub.f32 %v1074_v17, %v3418_v30 }
 0x2b9   :  { %1933 = vmatmul.mubr.f32.vlgmr.msra.gmra.mrb[2].mxu1 %v1710_v58  ;;  %2525 = vmatmul.mubr.f32.vlgmr.msra.gmra.mrb[4].mxu0 %v1710_v58  ;;  %v8745_v58 = vpack.c.bf16 %v2832_v50, %v2828_v39  ;;  %v8781_v17 = vsub.f32 %v1079_v32, %v2836_v48  ;;  %v8811_v32 = vsub.f32 %v1085_v51, %v3432_v13 }
 0x2ba   :  { %7813 = vmatpush1.bf16.msra.mxu1 %v8499_v41  ;;  %7861 = vmatpush1.bf16.msra.mxu0 %v8516_v59 }
 0x2bb   :  { %1938 = vmatprep.mubr.f32.mxu1 %v8395_v18  ;;  %7815 = vmatprep.subr.bf16.mxu1 %v8520_v61 }
 0x2bc   :  { %2530 = vmatprep.mubr.f32.mxu0 %v8395_v18  ;;  %7863 = vmatprep.subr.bf16.mxu0 %v8545_v15 }
 0x2bd   :  { %1941 = vmatmul.mubr.f32.gmra.mrb[4].mxu1 %v8659_v29  ;;  %2533 = vmatmul.mubr.f32.gmra.mrb[6].mxu0 %v8659_v29  ;;  %v3424_v29 = vand.u32 4294901760, %v1077_v63 }
 0x2be   :  { %7817 = vmatpush1.bf16.msra.mxu1 %v8526_v2  ;;  %7865 = vmatpush1.bf16.msra.mxu0 %v8552_v19 }
 0x2bf   :  { %2019 = vmatprep.mubr.f32.mxu1 %v8395_v18  ;;  %7819 = vmatprep.subr.bf16.mxu1 %v8623_v12  ;;  %v8743_v12 = vsub.f32 %v1076_v60, %v2830_v16  ;;  %v8767_v55 = vsub.f32 %v1077_v63, %v3424_v29  ;;  %v3430_v60 = vand.u32 4294901760, %v1086_v27  ;;  %v8779_v16 = vpack.c.bf16 %v2840_v49, %v2836_v48 }
 0x2c0   :  { %2611 = vmatprep.mubr.f32.mxu0 %v8395_v18  ;;  %7867 = vmatprep.subr.bf16.mxu0 %v8633_v36  ;;  %v8749_v36 = vsub.f32 %v1071_v0, %v2828_v39  ;;  %v8773_v0 = vsub.f32 %v1080_v3, %v2834_v24  ;;  %v3515_v63 = vand.u32 4294901760, %v8757_v52  ;;  %v8802_v3 = vpack.c.bf16 %v3432_v13, %v3428_v1 }
 0x2c1   :  { %2023 = vmatmul.mubr.f32.vlgmr.msra.gmra.mrb[2].mxu1 %v8663_v26  ;;  %2615 = vmatmul.mubr.f32.vlgmr.msra.gmra.mrb[4].mxu0 %v8663_v26  ;;  %v8755_v26 = vpack.c.bf16 %v3422_v31, %v3418_v30  ;;  %v8796_v56 = vsub.f32 %v1086_v27, %v3430_v60  ;;  %v9430_v30 = vand.u32 4294901760, %v8765_v43  ;;  %v8809_v31 = vsub.f32 %v1081_v53, %v3428_v1 }
 0x2c2   :  { %7821 = vmatpush1.bf16.msra.mxu1 %v8629_v35  ;;  %7869 = vmatpush1.bf16.msra.mxu0 %v8635_v40  ;;  %v3426_v35 = vand.u32 4294901760, %v1082_v37  ;;  %v8763_v40 = vpack.c.bf16 %v3424_v29, %v3420_v7 }
 0x2c3   :  { %2028 = vmatprep.mubr.f32.mxu1 %v8395_v18  ;;  %7823 = vmatprep.subr.bf16.mxu1 %v8637_v44  ;;  %v8771_v44 = vpack.c.bf16 %v2838_v25, %v2834_v24  ;;  %v3522_v27 = vsub.f32 %v8765_v43, %v9430_v30 }
 0x2c4   :  { %2620 = vmatprep.mubr.f32.mxu0 %v8395_v18  ;;  %7871 = vmatprep.subr.bf16.mxu0 %v8641_v4  ;;  %v8777_v4 = vsub.f32 %v1084_v45, %v2838_v25  ;;  %v8788_v39 = vsub.f32 %v1082_v37, %v3426_v35  ;;  %v8794_v50 = vpack.c.bf16 %v3430_v60, %v3426_v35  ;;  %v2941_v45 = vand.u32 4294901760, %v8751_v28 }
 0x2c5   :  { %2032 = vmatmul.mubr.f32.gmra.mrb[4].mxu1 %v8666_v23  ;;  %2624 = vmatmul.mubr.f32.gmra.mrb[6].mxu0 %v8666_v23  ;;  %v8786_v23 = vsub.f32 %v1083_v33, %v2840_v49  ;;  %v2924_v33 = vsub.f32 %v8739_v54, %v2923_v20  ;;  %v9424_v25 = vand.u32 4294901760, %v8796_v56  ;;  %v9425_v49 = vand.u32 4294901760, %v8781_v17 }
 0x2c6   :  { %7825 = vmatpush1.bf16.msra.mxu1 %v8639_v57  ;;  %7873 = vmatpush1.bf16.msra.mxu0 %v8643_v8  ;;  %v2935_v57 = vand.u32 4294901760, %v8743_v12  ;;  %v2929_v8 = vand.u32 4294901760, %v8749_v36  ;;  %v9422_v29 = vand.u32 4294901760, %v8777_v4  ;;  %v9428_v24 = vand.u32 4294901760, %v8788_v39 }
 0x2c7   :  { %2126 = vmatprep.mubr.f32.mxu1 %v8395_v18  ;;  %7827 = vmatprep.subr.bf16.mxu1 %v8497_v38  ;;  %v3527_v38 = vand.u32 4294901760, %v8759_v46  ;;  %v2925_v53 = vand.u32 4294901760, %v2924_v33  ;;  %v9426_v51 = vand.u32 4294901760, %v8786_v23  ;;  %v9427_v35 = vand.u32 4294901760, %v8809_v31 }
 0x2c8   :  { %2718 = vmatprep.mubr.f32.mxu0 %v8395_v18  ;;  %7875 = vmatprep.subr.bf16.mxu0 %v8508_v47  ;;  %v9421_v47 = vand.u32 4294901760, %v8767_v55  ;;  %v2936_v7 = vsub.f32 %v8743_v12, %v2935_v57  ;;  %v9429_v60 = vand.u32 4294901760, %v8811_v32 }
 0x2c9   :  { %2128 = vmatmul.mubr.f32.vlgmr.msra.gmra.mrb[2].mxu1 %v8656_v10  ;;  %2720 = vmatmul.mubr.f32.vlgmr.msra.gmra.mrb[4].mxu0 %v8656_v10  ;;  %v3528_v37 = vsub.f32 %v8759_v46, %v3527_v38 }
 0x2ca   :  { %7829 = vmatpush1.bf16.msra.mxu1 %v8499_v41  ;;  %7877 = vmatpush1.bf16.msra.mxu0 %v8516_v59  ;;  %v2930_v41 = vsub.f32 %v8749_v36, %v2929_v8  ;;  %v9423_v59 = vand.u32 4294901760, %v8773_v0  ;;  %v3534_v48 = vsub.f32 %v8767_v55, %v9421_v47  ;;  %v2937_v1 = vand.u32 4294901760, %v2936_v7 }
 0x2cb   :  { %2133 = vmatprep.mubr.f32.mxu1 %v8395_v18  ;;  %7831 = vmatprep.subr.bf16.mxu1 %v8520_v61  ;;  %v3516_v61 = vsub.f32 %v8757_v52, %v3515_v63  ;;  %v3529_v33 = vand.u32 4294901760, %v3528_v37  ;;  %v3540_v47 = vsub.f32 %v8788_v39, %v9428_v24  ;;  %v3552_v7 = vsub.f32 %v8796_v56, %v9424_v25 }
 0x2cc   :  { %2725 = vmatprep.mubr.f32.mxu0 %v8395_v18  ;;  %7879 = vmatprep.subr.bf16.mxu0 %v8545_v15  ;;  %v2942_v15 = vsub.f32 %v8751_v28, %v2941_v45  ;;  %v2931_v13 = vand.u32 4294901760, %v2930_v41  ;;  %v2948_v21 = vsub.f32 %v8773_v0, %v9423_v59  ;;  %v3535_v59 = vand.u32 4294901760, %v3534_v48 }
 0x2cd   :  { %2135 = vmatmul.mubr.f32.gmra.mrb[4].mxu1 %v8653_v62  ;;  %2727 = vmatmul.mubr.f32.gmra.mrb[6].mxu0 %v8653_v62  ;;  %v2966_v37 = vsub.f32 %v8786_v23, %v9426_v51  ;;  %v3546_v25 = vsub.f32 %v8809_v31, %v9427_v35  ;;  %v3541_v35 = vand.u32 4294901760, %v3540_v47  ;;  %v3553_v24 = vand.u32 4294901760, %v3552_v7 }
 0x2ce   :  { %7833 = vmatpush1.bf16.msra.mxu1 %v8526_v2  ;;  %7881 = vmatpush1.bf16.msra.mxu0 %v8552_v19  ;;  %v2960_v2 = vsub.f32 %v8777_v4, %v9422_v29  ;;  %v3517_v19 = vand.u32 4294901760, %v3516_v61  ;;  %v2943_v41 = vand.u32 4294901760, %v2942_v15  ;;  %v3523_v29 = vand.u32 4294901760, %v3522_v27 }
 0x2cf   :  { %2213 = vmatprep.mubr.f32.mxu1 %v8395_v18  ;;  %2805 = vmatprep.mubr.f32.mxu0 %v8395_v18  ;;  %v2954_v61 = vsub.f32 %v8781_v17, %v9425_v49  ;;  %v7890_v15 = vpack.c.bf16 %v2937_v1, %v2925_v53  ;;  %v2949_v27 = vand.u32 4294901760, %v2948_v21  ;;  %v8888_v49 = vand.u32 4294901760, %v8729_v11 }
 0x2d0   :  { %7883 = vmatprep.subr.bf16.mxu1 %v8737_v9  ;;  %7931 = vmatprep.subr.bf16.mxu0 %v8755_v26  ;;  %v2961_v48 = vand.u32 4294901760, %v2960_v2  ;;  %v7938_v51 = vpack.c.bf16 %v3529_v33, %v3517_v19  ;;  %v7940_v30 = vpack.c.bf16 %v3535_v59, %v3523_v29  ;;  %v2967_v53 = vand.u32 4294901760, %v2966_v37 }
 0x2d1   :  { %2215 = vmatmul.mubr.f32.vlgmr.msra.gmra.mrb[2].mxu1 %v8656_v10  ;;  %2807 = vmatmul.mubr.f32.vlgmr.msra.gmra.mrb[4].mxu0 %v8656_v10  ;;  %v3558_v10 = vsub.f32 %v8811_v32, %v9429_v60  ;;  %v7892_v60 = vpack.c.bf16 %v2943_v41, %v2931_v13  ;;  %v2955_v21 = vand.u32 4294901760, %v2954_v61  ;;  %v3547_v1 = vand.u32 4294901760, %v3546_v25  ;;  %v8926_v41 = vpop.permute.xlu1 %4017 }
 0x2d2   :  { %7885 = vmatpush1.bf16.msra.mxu1 %v8745_v58  ;;  %7933 = vmatpush1.bf16.msra.mxu0 %v8763_v40  ;;  %v2903_v47 = vand.u32 4294901760, %v2902_v14  ;;  %v7894_v19 = vpack.c.bf16 %v2961_v48, %v2949_v27  ;;  %v7942_v59 = vpack.c.bf16 %v3553_v24, %v3541_v35  ;;  %v7898_v14 = vpack.c.bf16 %v8743_v12, %v8739_v54 }
 0x2d3   :  { %2220 = vmatprep.mubr.f32.mxu1 %v8395_v18  ;;  %2812 = vmatprep.mubr.f32.mxu0 %v8395_v18  ;;  %v3559_v2 = vand.u32 4294901760, %v3558_v10  ;;  %v7896_v29 = vpack.c.bf16 %v2967_v53, %v2955_v21  ;;  %v7948_v24 = vpack.c.bf16 %v8767_v55, %v8765_v43  ;;  %v7902_v35 = vpack.c.bf16 %v8777_v4, %v8773_v0  ;;  %v7268_v10 = vld [vmem:[%s9414_s0 + $0x30] sm:$0xff] }
 0x2d4   :  { %7887 = vmatprep.subr.bf16.mxu1 %v8771_v44  ;;  %7935 = vmatprep.subr.bf16.mxu0 %v8794_v50  ;;  %v7904_v33 = vpack.c.bf16 %v8786_v23, %v8781_v17  ;;  %v7952_v7 = vpack.c.bf16 %v8811_v32, %v8809_v31  ;;  %v7914_v37 = vpack.c.bf16 %v2935_v57, %v2923_v20  ;;  %v9435_v12 = vand.u32 4294901760, %v8765_v43 }
 0x2d5   :  { %2222 = vmatmul.mubr.f32.gmra.mrb[4].mxu1 %v8653_v62  ;;  %2814 = vmatmul.mubr.f32.gmra.mrb[6].mxu0 %v8653_v62  ;;  %v2913_v62 = vsub.f32 %v8729_v11, %v8888_v49  ;;  %v7944_v25 = vpack.c.bf16 %v3559_v2, %v3547_v1  ;;  %v8937_v61 = vpop.permute.xlu1 %4019  ;;  %v7916_v54 = vpack.c.bf16 %v2941_v45, %v2929_v8  ;;  %v4030_v20 = vand.u32 4294901760, %v8926_v41 }
 0x2d6   :  { %7889 = vmatpush1.bf16.msra.mxu1 %v8779_v16  ;;  %7937 = vmatpush1.bf16.msra.mxu0 %v8802_v3  ;;  %v9438_v57 = vand.u32 4294901760, %v8777_v4  ;;  %v9439_v43 = vand.u32 4294901760, %v8788_v39  ;;  %v9442_v4 = vand.u32 4294901760, %v8786_v23  ;;  %v9443_v27 = vand.u32 4294901760, %v8809_v31 }
 0x2d7   :  { %2898 = vmatprep.mubr.f32.mxu1 %v8395_v18  ;;  %7891 = vmatprep.subr.bf16.mxu1 %v7890_v15  ;;  %v2914_v13 = vand.u32 4294901760, %v2913_v62  ;;  %v4033_v15 = vand.u32 4294901760, %v8937_v61  ;;  %v9001_v53 = vsub.f32 %v8926_v41, %v4030_v20  ;;  %v4539_v62 = vld [vmem:[#allocation2 + $0x128] sm:$0xff] }
 0x2d8   :  { %3490 = vmatprep.mubr.f32.mxu0 %v8395_v18  ;;  %7939 = vmatprep.subr.bf16.mxu0 %v7938_v51  ;;  %v7946_v51 = vpack.c.bf16 %v8759_v46, %v8757_v52  ;;  %v9436_v52 = vand.u32 4294901760, %v8767_v55  ;;  %v9440_v55 = vand.u32 4294901760, %v8796_v56 }
 0x2d9   :  { %2904 = vmatmul.mubr.f32.vlgmr.msra.gmra.mrb[2].mxu1 %v2903_v47  ;;  %3496 = vmatmul.mubr.f32.vlgmr.msra.gmra.mrb[4].mxu0 %v2903_v47  ;;  %v4119_v31 = vand.u32 4294901760, %v9001_v53 }
 0x2da   :  { %7893 = vmatpush1.bf16.msra.mxu1 %v7892_v60  ;;  %7941 = vmatpush1.bf16.msra.mxu0 %v7940_v30  ;;  %v7900_v30 = vpack.c.bf16 %v8751_v28, %v8749_v36  ;;  %v7950_v60 = vpack.c.bf16 %v8796_v56, %v8788_v39  ;;  %v7964_v46 = vpack.c.bf16 %v9436_v52, %v9435_v12  ;;  %v4024_v36 = vsel %vm45_vm0, %v7268_v10, 0  ;;  %v7269_v28 = vld [vmem:[%s9414_s0 + $0x38] sm:$0xff]  ;;  %v4543_v52 = vld [vmem:[#allocation2 + $0x148] sm:$0xff] }
 0x2db   :  { %2909 = vmatprep.mubr.f32.mxu1 %v8395_v18  ;;  %7895 = vmatprep.subr.bf16.mxu1 %v7894_v19  ;;  %v7966_v8 = vpack.c.bf16 %v9440_v55, %v9439_v43  ;;  %v9444_v39 = vand.u32 4294901760, %v8811_v32  ;;  %v8997_v48 = vand.u32 4294901760, %v4024_v36  ;;  %v4027_v21 = vsel %vm45_vm0, %v7269_v28, 0  ;;  %v4549_v28 = vld [vmem:[#allocation2 + $0x178] sm:$0xff]  ;;  %v4542_v43 = vld [vmem:[#allocation2 + $0x140] sm:$0xff] }
 0x2dc   :  { %3501 = vmatprep.mubr.f32.mxu0 %v8395_v18  ;;  %7943 = vmatprep.subr.bf16.mxu0 %v7942_v59  ;;  %v4120_v2 = vsub.f32 %v9001_v53, %v4119_v31  ;;  %v4537_v59 = vld [vmem:[#allocation2 + $0x118] sm:$0xff] }
 0x2dd   :  { %2915 = vmatmul.mubr.f32.gmra.mrb[4].mxu1 %v2914_v13  ;;  %3507 = vmatmul.mubr.f32.gmra.mrb[6].mxu0 %v2914_v13  ;;  %v7968_v56 = vpack.c.bf16 %v9444_v39, %v9443_v27  ;;  %v4097_v23 = vsub.f32 %v4024_v36, %v8997_v48  ;;  %v4541_v13 = vld [vmem:[#allocation2 + $0x138] sm:$0xff]  ;;  %v4564_v36 = vand.u32 4294901760, %v4543_v52 }
 0x2de   :  { %7897 = vmatpush1.bf16.msra.mxu1 %v7896_v29  ;;  %7945 = vmatpush1.bf16.msra.mxu0 %v7944_v25  ;;  %v4560_v25 = vand.u32 4294901760, %v4539_v62 }
 0x2df   :  { %3025 = vmatprep.mubr.f32.mxu1 %v8395_v18  ;;  %7899 = vmatprep.subr.bf16.mxu1 %v7898_v14  ;;  %v4098_v1 = vand.u32 4294901760, %v4097_v23  ;;  %v5148_v14 = vand.u32 4294901760, %v4537_v59 }
 0x2e0   :  { %3617 = vmatprep.mubr.f32.mxu0 %v8395_v18  ;;  %7947 = vmatprep.subr.bf16.mxu0 %v7946_v51  ;;  %v4534_v51 = vld [vmem:[#allocation2 + $0x100] sm:$0xff] }
 0x2e1   :  { %3027 = vmatmul.mubr.f32.vlgmr.msra.gmra.mrb[2].mxu1 %v8687_v34  ;;  %3619 = vmatmul.mubr.f32.vlgmr.msra.gmra.mrb[4].mxu0 %v8687_v34 }
 0x2e2   :  { %7901 = vmatpush1.bf16.msra.mxu1 %v7900_v30  ;;  %7949 = vmatpush1.bf16.msra.mxu0 %v7948_v24  ;;  %v4538_v30 = vld [vmem:[#allocation2 + $0x120] sm:$0xff]  ;;  %v5152_v24 = vand.u32 4294901760, %v4541_v13 }
 0x2e3   :  { %3032 = vmatprep.mubr.f32.mxu1 %v8395_v18  ;;  %7903 = vmatprep.subr.bf16.mxu1 %v7902_v35  ;;  %v4558_v35 = vand.u32 4294901760, %v4534_v51 }
 0x2e4   :  { %3624 = vmatprep.mubr.f32.mxu0 %v8395_v18  ;;  %7951 = vmatprep.subr.bf16.mxu0 %v7950_v60  ;;  %v4562_v60 = vand.u32 4294901760, %v4538_v30  ;;  %v9057_v10 = vpack.c.bf16 %v5152_v24, %v5148_v14 }
 0x2e5   :  { %3034 = vmatmul.mubr.f32.gmra.mrb[4].mxu1 %v8715_v5  ;;  %3626 = vmatmul.mubr.f32.gmra.mrb[6].mxu0 %v8715_v5  ;;  %v9063_v12 = vsub.f32 %v4534_v51, %v4558_v35 }
 0x2e6   :  { %7905 = vmatpush1.bf16.msra.mxu1 %v7904_v33  ;;  %7953 = vmatpush1.bf16.msra.mxu0 %v7952_v7  ;;  %v4536_v33 = vld [vmem:[#allocation2 + $0x110] sm:$0xff] }
 0x2e7   :  { %3120 = vmatprep.mubr.f32.mxu1 %v8395_v18  ;;  %7907 = vmatprep.subr.bf16.mxu1 %v8737_v9  ;;  %v4540_v7 = vld [vmem:[#allocation2 + $0x130] sm:$0xff] }
 0x2e8   :  { %3712 = vmatprep.mubr.f32.mxu0 %v8395_v18  ;;  %7955 = vmatprep.subr.bf16.mxu0 %v8755_v26 }
 0x2e9   :  { %3123 = vmatmul.mubr.f32.vlgmr.msra.gmra.mrb[2].mxu1 %v8706_v42  ;;  %3715 = vmatmul.mubr.f32.vlgmr.msra.gmra.mrb[4].mxu0 %v8706_v42  ;;  %v7962_v42 = vpack.c.bf16 %v3527_v38, %v3515_v63  ;;  %v8985_v38 = vsub.f32 %v8937_v61, %v4033_v15 }
 0x2ea   :  { %7909 = vmatpush1.bf16.msra.mxu1 %v8745_v58  ;;  %7957 = vmatpush1.bf16.msra.mxu0 %v8763_v40 }
 0x2eb   :  { %3128 = vmatprep.mubr.f32.mxu1 %v8395_v18  ;;  %7911 = vmatprep.subr.bf16.mxu1 %v8771_v44 }
 0x2ec   :  { %3720 = vmatprep.mubr.f32.mxu0 %v8395_v18  ;;  %7959 = vmatprep.subr.bf16.mxu0 %v8794_v50 }
 0x2ed   :  { %3131 = vmatmul.mubr.f32.gmra.mrb[4].mxu1 %v8729_v11  ;;  %3723 = vmatmul.mubr.f32.gmra.mrb[6].mxu0 %v8729_v11  ;;  %v9437_v11 = vand.u32 4294901760, %v8773_v0  ;;  %v9441_v0 = vand.u32 4294901760, %v8781_v17  ;;  %v9008_v17 = vand.u32 4294901760, %v4027_v21 }
 0x2ee   :  { %7913 = vmatpush1.bf16.msra.mxu1 %v8779_v16  ;;  %7961 = vmatpush1.bf16.msra.mxu0 %v8802_v3 }
 0x2ef   :  { %3209 = vmatprep.mubr.f32.mxu1 %v8395_v18  ;;  %7915 = vmatprep.subr.bf16.mxu1 %v7914_v37  ;;  %v7918_v63 = vpack.c.bf16 %v9438_v57, %v9437_v11  ;;  %v7920_v45 = vpack.c.bf16 %v9442_v4, %v9441_v0  ;;  %v9053_v37 = vsub.f32 %v4539_v62, %v4560_v25  ;;  %v5150_v57 = vand.u32 4294901760, %v4536_v33  ;;  %v4546_v0 = vld [vmem:[#allocation2 + $0x160] sm:$0xff] }
 0x2f0   :  { %3801 = vmatprep.mubr.f32.mxu0 %v8395_v18  ;;  %7963 = vmatprep.subr.bf16.mxu0 %v7962_v42  ;;  %v9055_v42 = vsub.f32 %v4537_v59, %v5148_v14  ;;  %v9066_v11 = vsub.f32 %v4538_v30, %v4562_v60  ;;  %v4566_v4 = vand.u32 4294901760, %v4542_v43  ;;  %v4659_v59 = vand.u32 4294901760, %v9063_v12 }
 0x2f1   :  { %3213 = vmatmul.mubr.f32.vlgmr.msra.gmra.mrb[2].mxu1 %v8718_v6  ;;  %3805 = vmatmul.mubr.f32.vlgmr.msra.gmra.mrb[4].mxu0 %v8718_v6  ;;  %v4126_v6 = vand.u32 4294901760, %v8985_v38  ;;  %v9072_v39 = vsub.f32 %v4536_v33, %v5150_v57 }
 0x2f2   :  { %7917 = vmatpush1.bf16.msra.mxu1 %v7916_v54  ;;  %7965 = vmatpush1.bf16.msra.mxu0 %v7964_v46  ;;  %v9061_v54 = vpack.c.bf16 %v4562_v60, %v4558_v35  ;;  %v4547_v46 = vld [vmem:[#allocation2 + $0x168] sm:$0xff]  ;;  %v4660_v35 = vsub.f32 %v9063_v12, %v4659_v59 }
 0x2f3   :  { %3218 = vmatprep.mubr.f32.mxu1 %v8395_v18  ;;  %7919 = vmatprep.subr.bf16.mxu1 %v7918_v63  ;;  %v4127_v32 = vsub.f32 %v8985_v38, %v4126_v6  ;;  %v5154_v63 = vand.u32 4294901760, %v4540_v7  ;;  %v4568_v55 = vand.u32 4294901760, %v4547_v46  ;;  %v5251_v14 = vand.u32 4294901760, %v9072_v39 }
 0x2f4   :  { %3810 = vmatprep.mubr.f32.mxu0 %v8395_v18  ;;  %7967 = vmatprep.subr.bf16.mxu0 %v7966_v8 }
 0x2f5   :  { %3222 = vmatmul.mubr.f32.gmra.mrb[4].mxu1 %v8888_v49  ;;  %3814 = vmatmul.mubr.f32.gmra.mrb[6].mxu0 %v8888_v49  ;;  %v4107_v49 = vsub.f32 %v4027_v21, %v9008_v17  ;;  %v9070_v27 = vpack.c.bf16 %v5154_v63, %v5150_v57  ;;  %v4548_v21 = vld [vmem:[#allocation2 + $0x170] sm:$0xff]  ;;  %v4661_v57 = vand.u32 4294901760, %v4660_v35 }
 0x2f6   :  { %7921 = vmatpush1.bf16.msra.mxu1 %v7920_v45  ;;  %7969 = vmatpush1.bf16.msra.mxu0 %v7968_v56  ;;  %v4544_v45 = vld [vmem:[#allocation2 + $0x150] sm:$0xff]  ;;  %v9074_v56 = vsub.f32 %v4540_v7, %v5154_v63  ;;  %v5252_v7 = vsub.f32 %v9072_v39, %v5251_v14 }
 0x2f7   :  { %3316 = vmatprep.mubr.f32.mxu1 %v8395_v18  ;;  %7923 = vmatprep.subr.bf16.mxu1 %v8737_v9  ;;  %v7978_v9 = vpack.c.bf16 %v4033_v15, %v4030_v20  ;;  %v9059_v15 = vsub.f32 %v4541_v13, %v5152_v24  ;;  %v4545_v20 = vld [vmem:[#allocation2 + $0x158] sm:$0xff] }
 0x2f8   :  { %3908 = vmatprep.mubr.f32.mxu0 %v8395_v18  ;;  %7971 = vmatprep.subr.bf16.mxu0 %v8755_v26  ;;  %v4128_v26 = vand.u32 4294901760, %v4127_v32  ;;  %v5156_v8 = vand.u32 4294901760, %v4545_v20  ;;  %v4570_v32 = vand.u32 4294901760, %v4546_v0  ;;  %v5263_v51 = vand.u32 4294901760, %v9074_v56 }
 0x2f9   :  { %3318 = vmatmul.mubr.f32.vlgmr.msra.gmra.mrb[2].mxu1 %v8687_v34  ;;  %3910 = vmatmul.mubr.f32.vlgmr.msra.gmra.mrb[4].mxu0 %v8687_v34 }
 0x2fa   :  { %7925 = vmatpush1.bf16.msra.mxu1 %v8745_v58  ;;  %7973 = vmatpush1.bf16.msra.mxu0 %v8763_v40  ;;  %v4108_v58 = vand.u32 4294901760, %v4107_v49  ;;  %v4099_v40 = vsub.f32 %v4097_v23, %v4098_v1 }
 0x2fb   :  { %3323 = vmatprep.mubr.f32.mxu1 %v8395_v18  ;;  %7927 = vmatprep.subr.bf16.mxu1 %v8771_v44  ;;  %v4121_v44 = vand.u32 4294901760, %v4120_v2  ;;  %v5162_v2 = vand.u32 4294901760, %v4548_v21 }
 0x2fc   :  { %3915 = vmatprep.mubr.f32.mxu0 %v8395_v18  ;;  %7975 = vmatprep.subr.bf16.mxu0 %v8794_v50  ;;  %v4109_v47 = vsub.f32 %v4107_v49, %v4108_v58  ;;  %v4100_v19 = vand.u32 4294901760, %v4099_v40  ;;  %v9096_v40 = vpack.c.bf16 %v4570_v32, %v4566_v4 }
 0x2fd   :  { %3325 = vmatmul.mubr.f32.gmra.mrb[4].mxu1 %v8715_v5  ;;  %3917 = vmatmul.mubr.f32.gmra.mrb[6].mxu0 %v8715_v5  ;;  %v7982_v50 = vpack.c.bf16 %v4128_v26, %v4121_v44  ;;  %v4665_v26 = vand.u32 4294901760, %v9053_v37  ;;  %v9098_v44 = vsub.f32 %v4546_v0, %v4570_v32 }
 0x2fe   :  { %7929 = vmatpush1.bf16.msra.mxu1 %v8779_v16  ;;  %7977 = vmatpush1.bf16.msra.mxu0 %v8802_v3  ;;  %v4110_v16 = vand.u32 4294901760, %v4109_v47  ;;  %v7994_v3 = vpack.c.bf16 %v4126_v6, %v4119_v31  ;;  %v9080_v6 = vsub.f32 %v4547_v46, %v4568_v55  ;;  %v5257_v47 = vand.u32 4294901760, %v9059_v15 }
 0x2ff   :  { %7979 = vmatprep.subr.bf16.mxu1 %v7978_v9  ;;  %3403 = vmatprep.mubr.f32.mxu1 %v8395_v18 }
 0x300   :  { %3995 = vmatprep.mubr.f32.mxu0 %v8395_v18  ;;  %8051 = vmatprep.subr.bf16.mxu0 %v9057_v10  ;;  %v5258_v62 = vsub.f32 %v9059_v15, %v5257_v47 }
 0x301   :  { %3405 = vmatmul.mubr.f32.vlgmr.msra.gmra.mrb[2].mxu1 %v8687_v34  ;;  %3997 = vmatmul.mubr.f32.vlgmr.msra.gmra.mrb[4].mxu0 %v8687_v34  ;;  %v7986_v34 = vpack.c.bf16 %v8985_v38, %v9001_v53  ;;  %v5160_v38 = vand.u32 4294901760, %v4549_v28  ;;  %v9078_v53 = vpack.c.bf16 %v4568_v55, %v4564_v36 }
 0x302   :  { %7981 = vmatpush3.bf16.msra.mxu1 %v7978_v9  ;;  %3410 = vmatprep.mubr.f32.mxu1 %v8395_v18  ;;  %v5259_v24 = vand.u32 4294901760, %v5258_v62 }
 0x303   :  { %7983 = vmatprep.subr.bf16.mxu1 %v7982_v50  ;;  %4002 = vmatprep.mubr.f32.mxu0 %v8395_v18  ;;  %v9087_v31 = vsub.f32 %v4549_v28, %v5160_v38  ;;  %v5253_v28 = vand.u32 4294901760, %v5252_v7 }
 0x304   :  { %8053 = vmatpush1.bf16.msra.mxu0 %v9070_v27 }
 0x305   :  { %3412 = vmatmul.mubr.f32.gmra.mrb[4].mxu1 %v8715_v5  ;;  %4004 = vmatmul.mubr.f32.gmra.mrb[6].mxu0 %v8715_v5  ;;  %v4535_v5 = vld [vmem:[#allocation2 + $0x108] sm:$0xff] }
 0x306   :  { %7550 = vmatprep.mubr.f32.mxu1 %v4100_v19  ;;  %5220 = vmatprep.mubr.f32.mxu0 %v8395_v18  ;;  %v4556_v29 = vand.u32 4294901760, %v4535_v5 }
 0x308   :  { %v9049_v41 = vpack.c.bf16 %v4560_v25, %v4556_v29  ;;  %v9051_v61 = vsub.f32 %v4535_v5, %v4556_v29  ;;  %v4671_v29 = vand.u32 4294901760, %v9066_v11 }
 0x309   :  { %7551 = vmatmul.mubr.f32.vlgmr.msra.gmra.mrb[6].mxu1 %v4110_v16  ;;  %v9105_v16 = vsub.f32 %v4548_v21, %v5162_v2 }
 0x30a   :  { %7985 = vmatpush3.bf16.msra.mxu1 %v7982_v50  ;;  %7557 = vmatprep.mubr.f32.mxu1 %v8997_v48  ;;  %v4672_v60 = vsub.f32 %v9066_v11, %v4671_v29 }
 0x30b   :  { %7987 = vmatprep.subr.bf16.mxu1 %v7986_v34 }
 0x30c   :  { %v4673_v63 = vand.u32 4294901760, %v4672_v60 }
 0x311   :  { %7558 = vmatmul.mubr.f32.vlgmr.msra.gmra.mrb[6].mxu1 %v9008_v17 }
 0x312   :  { %7989 = vmatpush3.bf16.msra.mxu1 %v7986_v34  ;;  %7564 = vmatprep.mubr.f32.mxu1 %v4097_v23  ;;  %v9084_v23 = vsub.f32 %v4545_v20, %v5156_v8 }
 0x313   :  { %7991 = vmatprep.subr.bf16.mxu1 %v7978_v9 }
 0x319   :  { %7565 = vmatmul.mubr.f32.vlgmr.msra.gmra.mrb[6].mxu1 %v4107_v49  ;;  %v9089_v49 = vsub.f32 %v4542_v43, %v4566_v4  ;;  %v5281_v4 = vand.u32 4294901760, %v9087_v31 }
 0x31a   :  { %7993 = vmatpush3.bf16.msra.mxu1 %v7978_v9  ;;  %7571 = vmatprep.mubr.f32.mxu1 %v4098_v1  ;;  %v5158_v1 = vand.u32 4294901760, %v4544_v45 }
 0x31b   :  { %7995 = vmatprep.subr.bf16.mxu1 %v7994_v3 }
 0x31c   :  { %v9100_v50 = vsub.f32 %v4544_v45, %v5158_v1  ;;  %v9103_v19 = vpack.c.bf16 %v5162_v2, %v5158_v1  ;;  %v4683_v45 = vand.u32 4294901760, %v9089_v49  ;;  %v4695_v2 = vand.u32 4294901760, %v9098_v44 }
 0x31e   :  { %v5275_v62 = vand.u32 4294901760, %v9100_v50 }
 0x320   :  { %v5276_v7 = vsub.f32 %v9100_v50, %v5275_v62 }
 0x321   :  { %7572 = vmatmul.mubr.f32.vlgmr.msra.gmra.mrb[6].mxu1 %v4108_v58  ;;  %v5245_v58 = vand.u32 4294901760, %v9055_v42 }
 0x322   :  { %7997 = vmatpush3.bf16.msra.mxu1 %v7994_v3  ;;  %7578 = vmatprep.mubr.f32.mxu1 %v8997_v48  ;;  %v4666_v3 = vsub.f32 %v9053_v37, %v4665_v26 }
 0x323   :  { %7999 = vmatprep.subr.bf16.mxu1 %v7978_v9  ;;  %v5246_v5 = vsub.f32 %v9055_v42, %v5245_v58 }
 0x324   :  { %v4667_v13 = vand.u32 4294901760, %v4666_v3  ;;  %v5282_v3 = vsub.f32 %v9087_v31, %v5281_v4 }
 0x325   :  { %v5247_v30 = vand.u32 4294901760, %v5246_v5  ;;  %v4684_v5 = vsub.f32 %v9089_v49, %v4683_v45 }
 0x326   :  { %v5283_v60 = vand.u32 4294901760, %v5282_v3  ;;  %v8024_v3 = vpack.c.bf16 %v9098_v44, %v9089_v49 }
 0x327   :  { %v8058_v20 = vpack.c.bf16 %v5259_v24, %v5247_v30  ;;  %v5287_v30 = vand.u32 4294901760, %v9105_v16  ;;  %v8018_v24 = vpack.c.bf16 %v9053_v37, %v9051_v61  ;;  %v4015_v37 = vsub.s32 2, %v8646_v22 }
 0x329   :  { %7579 = vmatmul.mubr.f32.vlgmr.msra.gmra.mrb[6].mxu1 %v9008_v17 }
 0x32a   :  { %8001 = vmatpush3.bf16.msra.mxu1 %v7978_v9  ;;  %7585 = vmatprep.mubr.f32.mxu1 %v8997_v48  ;;  %v9076_v48 = vsub.f32 %v4543_v52, %v4564_v36  ;;  %v4653_v9 = vand.u32 4294901760, %v9051_v61  ;;  %v5264_v52 = vsub.f32 %v9074_v56, %v5263_v51  ;;  %v4689_v36 = vand.u32 4294901760, %v9080_v6 }
 0x32b   :  { %8003 = vmatprep.subr.bf16.mxu1 %v9049_v41 }
 0x32c   :  { %v4654_v34 = vsub.f32 %v9051_v61, %v4653_v9  ;;  %v4677_v46 = vand.u32 4294901760, %v9076_v48  ;;  %v5265_v43 = vand.u32 4294901760, %v5264_v52  ;;  %v4690_v0 = vsub.f32 %v9080_v6, %v4689_v36 }
 0x32d   :  { %v9185_v61 = vpack.c.bf16 %v5287_v30, %v5275_v62  ;;  %v9243_v62 = vld [vmem:[%s9418_s4 + $0x8] sm:$0xff] }
 0x32e   :  { %v4655_v25 = vand.u32 4294901760, %v4654_v34  ;;  %v4678_v55 = vsub.f32 %v9076_v48, %v4677_v46  ;;  %v8060_v21 = vpack.c.bf16 %v5265_v43, %v5253_v28  ;;  %v4691_v34 = vand.u32 4294901760, %v4690_v0 }
 0x32f   :  { %v5277_v43 = vand.u32 4294901760, %v5276_v7  ;;  %v8022_v0 = vpack.c.bf16 %v9080_v6, %v9076_v48  ;;  %v9177_v48 = vpack.c.bf16 %v5263_v51, %v5251_v14  ;;  %v9179_v6 = vpack.c.bf16 %v4689_v36, %v4677_v46 }
 0x330   :  { %v8010_v33 = vpack.c.bf16 %v4667_v13, %v4655_v25  ;;  %v4679_v32 = vand.u32 4294901760, %v4678_v55  ;;  %v4696_v13 = vsub.f32 %v9098_v44, %v4695_v2  ;;  %v8068_v55 = vpack.c.bf16 %v9074_v56, %v9072_v39 }
 0x331   :  { %7586 = vmatmul.mubr.f32.vlgmr.msra.gmra.mrb[6].mxu1 %v9008_v17  ;;  %v9082_v17 = vpack.c.bf16 %v5160_v38, %v5156_v8  ;;  %v5269_v8 = vand.u32 4294901760, %v9084_v23  ;;  %v9133_v38 = vpack.c.bf16 %v4673_v63, %v4661_v57  ;;  %v8066_v57 = vpack.c.bf16 %v9059_v15, %v9055_v42  ;;  %v9191_v42 = vld [vmem:[%s9418_s4] sm:$0xff] }
 0x332   :  { %4628 = vmatprep.mubr.f32.mxu1 %v8395_v18  ;;  %8005 = vmatpush1.bf16.msra.mxu1 %v9061_v54  ;;  %v8014_v35 = vpack.c.bf16 %v4691_v34, %v4679_v32  ;;  %v4697_v52 = vand.u32 4294901760, %v4696_v13  ;;  %v8020_v63 = vpack.c.bf16 %v9066_v11, %v9063_v12  ;;  %v8070_v34 = vpack.c.bf16 %v9087_v31, %v9084_v23 }
 0x333   :  { %8007 = vmatprep.subr.bf16.mxu1 %v9078_v53  ;;  %8055 = vmatprep.subr.bf16.mxu0 %v9082_v17  ;;  %v5270_v1 = vsub.f32 %v9084_v23, %v5269_v8  ;;  %v9167_v11 = vpack.c.bf16 %v4665_v26, %v4653_v9  ;;  %v9173_v39 = vpack.c.bf16 %v5257_v47, %v5245_v58  ;;  %v5846_v13 = vand.u32 4294901760, %v9243_v62 }
 0x334   :  { %8057 = vmatpush1.bf16.msra.mxu0 %v9103_v19  ;;  %v9175_v56 = vpack.c.bf16 %v4671_v29, %v4659_v59  ;;  %v9181_v23 = vpack.c.bf16 %v5281_v4, %v5269_v8  ;;  %v9183_v31 = vpack.c.bf16 %v4695_v2, %v4683_v45  ;;  %v4016_v15 = vrot.slane %v9191_v42, %v4015_v37 }
 0x335   :  { %8059 = vmatprep.subr.bf16.mxu0 %v8058_v20  ;;  %v5271_v25 = vand.u32 4294901760, %v5270_v1  ;;  %v5288_v20 = vsub.f32 %v9105_v16, %v5287_v30 }
 0x336   :  { %8009 = vmatpush1.bf16.msra.mxu1 %v9096_v40 }
 0x337   :  { %8011 = vmatprep.subr.bf16.mxu1 %v8010_v33  ;;  %v4685_v33 = vand.u32 4294901760, %v4684_v5  ;;  %v8062_v28 = vpack.c.bf16 %v5283_v60, %v5271_v25  ;;  %v5289_v1 = vand.u32 4294901760, %v5288_v20  ;;  %v8072_v5 = vpack.c.bf16 %v9105_v16, %v9100_v50 }
 0x339   :  { %v8016_v32 = vpack.c.bf16 %v4697_v52, %v4685_v33  ;;  %v8064_v12 = vpack.c.bf16 %v5289_v1, %v5277_v43 }
 0x404   :  { %v7587_v49 = vpop.f32.mrb[6].mxu1 }
 0x405   :  { %v8138_v9 = vadd.f32 %v7587_v49, %v4016_v15  ;;  %v4521_v26 = vpop.f32.mrb[7].mxu1 }
 0x406   :  { %v8139_v58 = vadd.f32 %v4521_v26, %v4016_v15 }
 0x407   :  { %v4532_v44 = vmax.f32 %v8138_v9, 0.0 }
 0x408   :  { %v4531_v50 = vmax.f32 %v8139_v58, 0.0 }
 0x409   :  { %v4554_v47 = vsel %vm9431_vm1, %v4532_v44, 0 }
 0x40a   :  { %v9195_v16 = vand.u32 4294901760, %v4554_v47  ;;  %v4551_v59 = vsel %vm9431_vm1, %v4531_v50, 0 }
 0x40b   :  { %v9198_v29 = vand.u32 4294901760, %v4551_v59 }
 0x40c   :  { %v4641_v14 = vsub.f32 %v4554_v47, %v9195_v16 }
 0x40d   :  { %v4630_v51 = vsub.f32 %v4551_v59, %v9198_v29 }
 0x40e   :  { %v9202_v36 = vand.u32 4294901760, %v4641_v14 }
 0x40f   :  { %v4631_v46 = vand.u32 4294901760, %v4630_v51 }
 0x410   :  { %v4643_v45 = vsub.f32 %v4641_v14, %v9202_v36 }
 0x411   :  { %v4632_v8 = vsub.f32 %v4630_v51, %v4631_v46 }
 0x412   :  { %v4644_v2 = vand.u32 4294901760, %v4643_v45 }
 0x413   :  { %v4633_v4 = vand.u32 4294901760, %v4632_v8 }
 0x415   :  { %4634 = vmatmul.mubr.f32.vlgmr.msra.gmra.mrb[2].mxu1 %v4633_v4  ;;  %5226 = vmatmul.mubr.f32.vlgmr.msra.gmra.mrb[4].mxu0 %v4633_v4 }
 0x416   :  { %8013 = vmatpush1.bf16.msra.mxu1 %v9133_v38  ;;  %8061 = vmatpush1.bf16.msra.mxu0 %v8060_v21  ;;  %v5838_v38 = vld [vmem:[%s9415_s1] sm:$0x1]  ;;  %s8397_s1 = smov 120  }
 0x417   :  { %4639 = vmatprep.mubr.f32.mxu1 %v8395_v18  ;;  %5231 = vmatprep.mubr.f32.mxu0 %v8395_v18  ;;  %v5843_v21 = vsel %vm9434_vm2, %v5838_v38, 0 }
 0x418   :  { %8015 = vmatprep.subr.bf16.mxu1 %v8014_v35  ;;  %8063 = vmatprep.subr.bf16.mxu0 %v8062_v28  ;;  %v5911_v25 = vand.u32 4294901760, %v5843_v21  ;;  %v9445_v35 = vlaneseq }
 0x419   :  { %4645 = vmatmul.mubr.f32.gmra.mrb[4].mxu1 %v4644_v2  ;;  %5237 = vmatmul.mubr.f32.gmra.mrb[6].mxu0 %v4644_v2 }
 0x41a   :  { %8017 = vmatpush1.bf16.msra.mxu1 %v8016_v32  ;;  %8065 = vmatpush1.bf16.msra.mxu0 %v8064_v12  ;;  %v5912_v30 = vsub.f32 %v5843_v21, %v5911_v25  ;;  %v5752_v60 = vand.u32 127, %v9445_v35  ;;  %v40_v12 = vld [vmem:[%s9418_s4 + $0x18] sm:$0xff] }
 0x41b   :  { %4755 = vmatprep.mubr.f32.mxu1 %v8395_v18  ;;  %5347 = vmatprep.mubr.f32.mxu0 %v8395_v18 }
 0x41c   :  { %8019 = vmatprep.subr.bf16.mxu1 %v8018_v24  ;;  %8067 = vmatprep.subr.bf16.mxu0 %v8066_v57  ;;  %v5923_v24 = vsub.f32 %v9243_v62, %v5846_v13  ;;  %v5754_v52 = vadd.s32 256, %v5752_v60  ;;  %v5753_v20 = vadd.s32 128, %v5752_v60  ;;  %v5755_v57 = vadd.s32 384, %v5752_v60 }
 0x41d   :  { %4757 = vmatmul.mubr.f32.vlgmr.msra.gmra.mrb[2].mxu1 %v9198_v29  ;;  %5349 = vmatmul.mubr.f32.vlgmr.msra.gmra.mrb[4].mxu0 %v9198_v29 }
 0x41e   :  { %8021 = vmatpush1.bf16.msra.mxu1 %v8020_v63  ;;  %8069 = vmatpush1.bf16.msra.mxu0 %v8068_v55 }
 0x41f   :  { %4762 = vmatprep.mubr.f32.mxu1 %v8395_v18  ;;  %5354 = vmatprep.mubr.f32.mxu0 %v8395_v18 }
 0x420   :  { %8023 = vmatprep.subr.bf16.mxu1 %v8022_v0  ;;  %8071 = vmatprep.subr.bf16.mxu0 %v8070_v34 }
 0x421   :  { %4764 = vmatmul.mubr.f32.gmra.mrb[4].mxu1 %v9195_v16  ;;  %5356 = vmatmul.mubr.f32.gmra.mrb[6].mxu0 %v9195_v16 }
 0x422   :  { %8025 = vmatpush1.bf16.msra.mxu1 %v8024_v3  ;;  %8073 = vmatpush1.bf16.msra.mxu0 %v8072_v5  ;;  %v39_v5 = vld [vmem:[%s9418_s4 + $0x10] sm:$0xff] }
 0x423   :  { %4850 = vmatprep.mubr.f32.mxu1 %v8395_v18  ;;  %5442 = vmatprep.mubr.f32.mxu0 %v8395_v18 }
 0x424   :  { %8027 = vmatprep.subr.bf16.mxu1 %v9049_v41  ;;  %8075 = vmatprep.subr.bf16.mxu0 %v9057_v10 }
 0x425   :  { %4853 = vmatmul.mubr.f32.vlgmr.msra.gmra.mrb[2].mxu1 %v4630_v51  ;;  %5445 = vmatmul.mubr.f32.vlgmr.msra.gmra.mrb[4].mxu0 %v4630_v51 }
 0x426   :  { %8029 = vmatpush1.bf16.msra.mxu1 %v9061_v54  ;;  %8077 = vmatpush1.bf16.msra.mxu0 %v9070_v27 }
 0x427   :  { %4858 = vmatprep.mubr.f32.mxu1 %v8395_v18  ;;  %5450 = vmatprep.mubr.f32.mxu0 %v8395_v18 }
 0x428   :  { %8031 = vmatprep.subr.bf16.mxu1 %v9078_v53  ;;  %8079 = vmatprep.subr.bf16.mxu0 %v9082_v17 }
 0x429   :  { %4861 = vmatmul.mubr.f32.gmra.mrb[4].mxu1 %v4641_v14  ;;  %5453 = vmatmul.mubr.f32.gmra.mrb[6].mxu0 %v4641_v14 }
 0x42a   :  { %8033 = vmatpush1.bf16.msra.mxu1 %v9096_v40  ;;  %8081 = vmatpush1.bf16.msra.mxu0 %v9103_v19 }
 0x42b   :  { %4939 = vmatprep.mubr.f32.mxu1 %v8395_v18  ;;  %5531 = vmatprep.mubr.f32.mxu0 %v8395_v18 }
 0x42c   :  { %8035 = vmatprep.subr.bf16.mxu1 %v9167_v11  ;;  %8083 = vmatprep.subr.bf16.mxu0 %v9173_v39 }
 0x42d   :  { %4943 = vmatmul.mubr.f32.vlgmr.msra.gmra.mrb[2].mxu1 %v4631_v46  ;;  %5535 = vmatmul.mubr.f32.vlgmr.msra.gmra.mrb[4].mxu0 %v4631_v46 }
 0x42e   :  { %8037 = vmatpush1.bf16.msra.mxu1 %v9175_v56  ;;  %8085 = vmatpush1.bf16.msra.mxu0 %v9177_v48 }
 0x42f   :  { %4948 = vmatprep.mubr.f32.mxu1 %v8395_v18  ;;  %5540 = vmatprep.mubr.f32.mxu0 %v8395_v18 }
 0x430   :  { %8039 = vmatprep.subr.bf16.mxu1 %v9179_v6  ;;  %8087 = vmatprep.subr.bf16.mxu0 %v9181_v23 }
 0x431   :  { %4952 = vmatmul.mubr.f32.gmra.mrb[4].mxu1 %v9202_v36  ;;  %5544 = vmatmul.mubr.f32.gmra.mrb[6].mxu0 %v9202_v36 }
 0x432   :  { %8041 = vmatpush1.bf16.msra.mxu1 %v9183_v31  ;;  %8089 = vmatpush1.bf16.msra.mxu0 %v9185_v61 }
 0x433   :  { %5046 = vmatprep.mubr.f32.mxu1 %v8395_v18  ;;  %5638 = vmatprep.mubr.f32.mxu0 %v8395_v18 }
 0x434   :  { %8043 = vmatprep.subr.bf16.mxu1 %v9049_v41  ;;  %8091 = vmatprep.subr.bf16.mxu0 %v9057_v10  ;;  %v5913_v41 = vand.u32 4294901760, %v5912_v30  ;;  %v5924_v10 = vand.u32 4294901760, %v5923_v24 }
 0x435   :  { %5048 = vmatmul.mubr.f32.vlgmr.msra.gmra.mrb[2].mxu1 %v9198_v29  ;;  %5640 = vmatmul.mubr.f32.vlgmr.msra.gmra.mrb[4].mxu0 %v9198_v29 }
 0x436   :  { %8045 = vmatpush1.bf16.msra.mxu1 %v9061_v54  ;;  %8093 = vmatpush1.bf16.msra.mxu0 %v9070_v27  ;;  %v5914_v54 = vsub.f32 %v5912_v30, %v5913_v41  ;;  %v5925_v27 = vsub.f32 %v5923_v24, %v5924_v10 }
 0x437   :  { %5053 = vmatprep.mubr.f32.mxu1 %v8395_v18  ;;  %5645 = vmatprep.mubr.f32.mxu0 %v8395_v18 }
 0x438   :  { %8047 = vmatprep.subr.bf16.mxu1 %v9078_v53  ;;  %8095 = vmatprep.subr.bf16.mxu0 %v9082_v17  ;;  %v5915_v53 = vand.u32 4294901760, %v5914_v54  ;;  %v5926_v17 = vand.u32 4294901760, %v5925_v27 }
 0x439   :  { %5055 = vmatmul.mubr.f32.gmra.mrb[4].mxu1 %v9195_v16  ;;  %5647 = vmatmul.mubr.f32.gmra.mrb[6].mxu0 %v9195_v16 }
 0x43a   :  { %8049 = vmatpush1.bf16.msra.mxu1 %v9096_v40  ;;  %8097 = vmatpush1.bf16.msra.mxu0 %v9103_v19  ;;  %v5756_v40 = vmul.u32 32, %v8646_v22  ;;  %v5750_v19 = vadd.s32 8, %v8646_v22  ;;  %v9448_v22 = vmov 0 }
 0x43b   :  { %5133 = vmatprep.mubr.f32.mxu1 %v8395_v18  ;;  %5725 = vmatprep.mubr.f32.mxu0 %v8395_v18 }
 0x43c   :  { %7588 = vmatprep.subr.mxu0 %v8395_v18  ;;  %7618 = vmatprep.subr.mxu1 %v8395_v18  ;;  %v5766_v33 = vadd.s32 32, %v5756_v40  ;;  %v5757_v7 = vmul.u32 32, %v5750_v19  ;;  %vm5758_vm4 = vcmp.ge.s32.totalorder %v5752_v60, %v5756_v40  ;;  %vm5760_vm6 = vcmp.ge.s32.totalorder %v5754_v52, %v5756_v40 }
 0x43d   :  { %5135 = vmatmul.mubr.f32.vlgmr.msra.gmra.mrb[2].mxu1 %v9198_v29  ;;  %5727 = vmatmul.mubr.f32.vlgmr.msra.gmra.mrb[4].mxu0 %v9198_v29  ;;  %vm5759_vm8 = vcmp.ge.s32.totalorder %v5753_v20, %v5756_v40  ;;  %vm5761_vm11 = vcmp.ge.s32.totalorder %v5755_v57, %v5756_v40 }
 0x43e   :  { %5140 = vmatprep.mubr.f32.mxu1 %v8395_v18  ;;  %5732 = vmatprep.mubr.f32.mxu0 %v8395_v18  ;;  %vm5768_vm5 = vcmp.lt.s32.totalorder %v5752_v60, %v5766_v33  ;;  %v5767_v63 = vadd.s32 32, %v5757_v7  ;;  %vm5770_vm7 = vcmp.lt.s32.totalorder %v5754_v52, %v5766_v33  ;;  %vm5769_vm9 = vcmp.lt.s32.totalorder %v5753_v20, %v5766_v33 }
 0x43f   :  { %7589 = vmatpush3.msra.mxu0 %v5846_v13  ;;  %6293 = vrot.lane.b32.xlu1 %v9243_v62, %s8397_s1  ;;  %vm9305_vm10 = vmand %vm5758_vm4, %vm5768_vm5  ;;  %vm5771_vm12 = vcmp.lt.s32.totalorder %v5755_v57, %v5766_v33  ;;  %vm5762_vm14 = vcmp.ge.s32.totalorder %v5752_v60, %v5757_v7  ;;  %vm5764_vm1 = vcmp.ge.s32.totalorder %v5754_v52, %v5757_v7  ;;  %v5839_v33 = vrot.slane %v9191_v42, 4 }
 0x440   :  { %7593 = vmatprep.subr.mxu0 %v8395_v18  ;;  %vm9309_vm13 = vmand %vm5760_vm6, %vm5770_vm7  ;;  %vm5772_vm15 = vcmp.lt.s32.totalorder %v5752_v60, %v5767_v63  ;;  %vm5763_vm4 = vcmp.ge.s32.totalorder %v5753_v20, %v5757_v7  ;;  %vm5773_vm5 = vcmp.lt.s32.totalorder %v5753_v20, %v5767_v63  ;;  %vm5765_vm7 = vcmp.ge.s32.totalorder %v5755_v57, %v5757_v7 }
 0x441   :  { %5142 = vmatmul.mubr.f32.gmra.mrb[4].mxu1 %v9195_v16  ;;  %5734 = vmatmul.mubr.f32.gmra.mrb[6].mxu0 %v9195_v16  ;;  %v9449_v22 = vsel %vm9309_vm13, 4294967295, %v9448_v22  ;;  %vm9313_vm0 = vmand %vm5759_vm8, %vm5769_vm9  ;;  %vm5775_vm13 = vcmp.lt.s32.totalorder %v5755_v57, %v5767_v63 }
 0x442   :  { %7590 = vmatprep.mubr.msk.f32.mxu0 %vm9432_vm3, %v8395_v18  ;;  %7620 = vmatprep.mubr.msk.f32.mxu1 %vm9432_vm3, %v8395_v18  ;;  %vm9317_vm2 = vmand %vm5761_vm11, %vm5771_vm12  ;;  %vm9460_vm12 = vnez %v9449_v22 }
 0x443   :  { %vm9321_vm6 = vmand %vm5762_vm14, %vm5772_vm15 }
 0x444   :  { %vm9325_vm9 = vmand %vm5763_vm4, %vm5773_vm5 }
 0x445   :  { %7591 = vmatmul.mubr.f32.vlgmr.msra.gmra.mrb[8].mxu0 %v5915_v53  ;;  %vm9329_vm11 = vmand %vm5765_vm7, %vm5775_vm13 }
 0x446   :  { %7594 = vmatpush3.msra.mxu0 %v5926_v17  ;;  %7595 = vmatprep.mubr.msk.f32.mxu0 %vm9432_vm3, %v8395_v18 }
 0x447   :  { %7598 = vmatprep.subr.mxu0 %v8395_v18 }
 0x44d   :  { %7596 = vmatmul.mubr.f32.vlgmr.msra.gmra.mrb[8].mxu0 %v5911_v25 }
 0x44e   :  { %7599 = vmatpush3.msra.mxu0 %v5923_v24  ;;  %7600 = vmatprep.mubr.msk.f32.mxu0 %vm9432_vm3, %v8395_v18 }
 0x44f   :  { %7603 = vmatprep.subr.mxu0 %v8395_v18 }
 0x455   :  { %7601 = vmatmul.mubr.f32.vlgmr.msra.gmra.mrb[8].mxu0 %v5912_v30 }
 0x456   :  { %7604 = vmatpush3.msra.mxu0 %v5846_v13  ;;  %7605 = vmatprep.mubr.msk.f32.mxu0 %vm9432_vm3, %v8395_v18 }
 0x457   :  { %7608 = vmatprep.subr.mxu0 %v8395_v18 }
 0x45d   :  { %7606 = vmatmul.mubr.f32.vlgmr.msra.gmra.mrb[8].mxu0 %v5913_v41 }
 0x45e   :  { %7609 = vmatpush3.msra.mxu0 %v5924_v10  ;;  %7610 = vmatprep.mubr.msk.f32.mxu0 %vm9432_vm3, %v8395_v18 }
 0x45f   :  { %7613 = vmatprep.subr.mxu0 %v8395_v18 }
 0x465   :  { %7611 = vmatmul.mubr.f32.vlgmr.msra.gmra.mrb[8].mxu0 %v5911_v25 }
 0x466   :  { %7614 = vmatpush3.msra.mxu0 %v5846_v13  ;;  %7615 = vmatprep.mubr.msk.f32.mxu0 %vm9432_vm3, %v8395_v18 }
 0x467   :  { %7643 = vmatprep.subr.mxu0 %v8395_v18 }
 0x46d   :  { %7616 = vmatmul.mubr.f32.vlgmr.msra.gmra.mrb[8].mxu0 %v5911_v25 }
 0x46e   :  { %7645 = vmatprep.mubr.msk.f32.mxu0 %vm9432_vm3, %v8395_v18  ;;  %vm5774_vm3 = vcmp.lt.s32.totalorder %v5754_v52, %v5767_v63 }
 0x46f   :  { %vm5782_vm8 = vmand %vm5764_vm1, %vm5774_vm3  ;;  %vm9461_vm1 = vcmask 64512   ;;  %vm9463_vm3 = vcmask 261120  }
 0x4b1   :  { %v6294_v62 = vpop.permute.xlu1 %6293 }
 0x4b2   :  { %v6300_v30 = vand.u32 4294901760, %v6294_v62 }
 0x4b4   :  { %7619 = vmatpush3.msra.mxu1 %v6300_v30  ;;  %7644 = vmatpush3.msra.mxu0 %v6300_v30  ;;  %v6377_v20 = vsub.f32 %v6294_v62, %v6300_v30 }
 0x4b5   :  { %7623 = vmatprep.subr.mxu1 %v8395_v18 }
 0x4b6   :  { %v6378_v22 = vand.u32 4294901760, %v6377_v20 }
 0x510   :  { %v5136_v0 = vpop.f32.mrb[2].mxu1  ;;  %v5728_v32 = vpop.f32.mrb[4].mxu0 }
 0x511   :  { %v5138_v34 = vpop.f32.mrb[3].mxu1  ;;  %v5730_v3 = vpop.f32.mrb[5].mxu0  ;;  %v5784_v11 = vsel %vm9305_vm10, %v5136_v0, 0.0  ;;  %v5786_v39 = vsel %vm9460_vm12, %v5728_v32, 0.0  ;;  %v6379_v0 = vsub.f32 %v6377_v20, %v6378_v22  ;;  %vm7236_vm10 = vcmask 57344  }
 0x512   :  { %v5785_v6 = vsel %vm9313_vm0, %v5138_v34, 0.0  ;;  %v5787_v23 = vsel %vm9317_vm2, %v5730_v3, 0.0  ;;  %vm9462_vm2 = vmmov 0  }
 0x513   :  { %v6380_v34 = vand.u32 4294901760, %v6379_v0 }
 0x514   :  { %v5143_v56 = vpop.f32.mrb[4].mxu1  ;;  %v5735_v48 = vpop.f32.mrb[6].mxu0 }
 0x515   :  { %v5788_v31 = vsel %vm9321_vm6, %v5143_v56, 0.0  ;;  %v5790_v61 = vsel %vm5782_vm8, %v5735_v48, 0.0  ;;  %v5145_v37 = vpop.f32.mrb[5].mxu1  ;;  %v5737_v15 = vpop.f32.mrb[7].mxu0 }
 0x516   :  { %v5792_v49 = vadd.f32 %v5788_v31, %v5784_v11  ;;  %v5806_v9 = vadd.f32 %v5790_v61, %v5786_v39  ;;  %v5789_v26 = vsel %vm9325_vm9, %v5145_v37, 0.0  ;;  %v5791_v58 = vsel %vm9329_vm11, %v5737_v15, 0.0 }
 0x517   :  { %v5799_v44 = vadd.f32 %v5789_v26, %v5785_v6  ;;  %v5813_v50 = vadd.f32 %v5791_v58, %v5787_v23  ;;  %v6749_v11 = vand.u32 4294901760, %v39_v5  ;;  %v6752_v39 = vand.u32 4294901760, %v40_v12  ;;  %v41_v6 = vld [vmem:[%s9418_s4 + $0x20] sm:$0xff]  ;;  %v42_v23 = vld [vmem:[%s9418_s4 + $0x28] sm:$0xff]  ;;  %s8399_s4 = smov [#allocation5]  }
 0x518   :  { %v5793_v47 = vrot.slane %v5792_v49, 4  ;;  %v5807_v16 = vrot.slane %v5806_v9, 4  ;;  %v6755_v37 = vand.u32 4294901760, %v41_v6  ;;  %v6758_v15 = vand.u32 4294901760, %v42_v23  ;;  %s7255_s15 = sshll.u32 %s8399_s4, 4  ;;  %s7256_s15 = int_to_ptr.vmem [resolvable:$true] %s7255_s15 }
 0x519   :  { %v5800_v59 = vrot.slane %v5799_v44, 4  ;;  %v5814_v29 = vrot.slane %v5813_v50, 4  ;;  %v9375_v56 = vsub.f32 %v39_v5, %v6749_v11  ;;  %v6836_v48 = vsub.f32 %v40_v12, %v6752_v39  ;;  %s8364_s16 = scalar_lea.vmem %s7256_s15, 16  ;;  %s8368_s17 = scalar_lea.vmem %s7256_s15, 32 }
 0x51a   :  { %v5794_v14 = vadd.f32 %v5793_v47, %v5792_v49  ;;  %v5808_v51 = vadd.f32 %v5807_v16, %v5806_v9  ;;  %v6843_v26 = vsub.f32 %v41_v6, %v6755_v37  ;;  %v6850_v58 = vsub.f32 %v42_v23, %v6758_v15  ;;  %p8365_p8 = scmp.ne.s32.totalorder %s7256_s15, %s8364_s16  ;;  %p8369_p9 = scmp.lt.s32.totalorder %s7256_s15, %s7256_s15 }
 0x51b   :  { %v5801_v46 = vadd.f32 %v5800_v59, %v5799_v44  ;;  %v5815_v36 = vadd.f32 %v5814_v29, %v5813_v50  ;;  %v6830_v31 = vand.u32 4294901760, %v9375_v56  ;;  %v6837_v61 = vand.u32 4294901760, %v6836_v48  ;;  %p8370_p10 = scmp.lt.s32.totalorder %s8368_s17, %s8364_s16 }
 0x51c   :  { %v5795_v8 = vrot.slane %v5794_v14, 2  ;;  %v5809_v4 = vrot.slane %v5808_v51, 2  ;;  %v6844_v47 = vand.u32 4294901760, %v6843_v26  ;;  %v6851_v16 = vand.u32 4294901760, %v6850_v58 }
 0x51d   :  { %v5802_v45 = vrot.slane %v5801_v46, 2  ;;  %v5816_v2 = vrot.slane %v5815_v36, 2  ;;  %v6831_v49 = vsub.f32 %v9375_v56, %v6830_v31  ;;  %v6838_v9 = vsub.f32 %v6836_v48, %v6837_v61  ;;  %p8371_p11 = por %p8370_p10, %p8369_p9 }
 0x51e   :  { %v5796_v38 = vadd.f32 %v5795_v8, %v5794_v14  ;;  %v5810_v21 = vadd.f32 %v5809_v4, %v5808_v51  ;;  %v6845_v29 = vsub.f32 %v6843_v26, %v6844_v47  ;;  %v6852_v14 = vsub.f32 %v6850_v58, %v6851_v16 }
 0x51f   :  { %v5803_v25 = vadd.f32 %v5802_v45, %v5801_v46  ;;  %v5817_v13 = vadd.f32 %v5816_v2, %v5815_v36  ;;  %v6832_v44 = vand.u32 4294901760, %v6831_v49  ;;  %v6839_v50 = vand.u32 4294901760, %v6838_v9  ;;  %p8372_p12 = pnand %p8371_p11, %p8365_p8 }
 0x520   :  { %v5797_v24 = vrot.slane %v5796_v38, 1  ;;  %v5811_v41 = vrot.slane %v5810_v21, 1  ;;  %v8398_v51 = vmov 0.0|0.0   ;;  %v6846_v46 = vand.u32 4294901760, %v6845_v29 }
 0x521   :  { %v5804_v10 = vrot.slane %v5803_v25, 1  ;;  %v5818_v54 = vrot.slane %v5817_v13, 1  ;;  %v8105_v59 = vpack.c.bf16 %v6839_v50, %v6832_v44  ;;  %8104 = vmatprep.subr.bf16.mxu0 %v8398_v51  ;;  %v6853_v36 = vand.u32 4294901760, %v6852_v14 }
 0x522   :  { %v5798_v27 = vadd.f32 %v5797_v24, %v5796_v38  ;;  %v5812_v53 = vadd.f32 %v5811_v41, %v5810_v21  ;;  %v8099_v4 = vpack.c.bf16 %v6752_v39, %v6749_v11  ;;  %v8102_v38 = vpack.c.bf16 %v6758_v15, %v6755_v37 }
 0x523   :  { %v5805_v17 = vadd.f32 %v5804_v10, %v5803_v25  ;;  %v5819_v40 = vadd.f32 %v5818_v54, %v5817_v13  ;;  %v8108_v8 = vpack.c.bf16 %v6853_v36, %v6846_v46  ;;  %v8111_v21 = vpack.c.bf16 %v6836_v48, %v9375_v56 }
 0x524   :  { %v5820_v19 = vadd.f32 %v5812_v53, %v5798_v27  ;;  %v8114_v62 = vpack.c.bf16 %v6850_v58, %v6843_v26  ;;  %v8123_v25 = vpack.c.bf16 %v6837_v61, %v6830_v31  ;;  %v8126_v13 = vpack.c.bf16 %v6851_v16, %v6844_v47 }
 0x525   :  { %v5821_v35 = vadd.f32 %v5819_v40, %v5805_v17  ;;  %v7233_v50 = vrot.slane %v9191_v42, 5 }
 0x527   :  { %v9348_v60 = vadd.f32 %v5821_v35, %v5820_v19 }
 0x529   :  { %5824 = vrot.lane.b32.xlu0 %v9348_v60, %s8393_s19 }
 0x540   :  { %v6287_v7 = vpop.f32.mrb[8].mxu0 }
 0x541   :  { %v8140_v52 = vadd.f32 %v6287_v7, %v5839_v33  ;;  %v7617_v57 = vpop.f32.mrb[9].mxu0 }
 0x543   :  { %v6291_v63 = vmax.f32 %v8140_v52, 0.0 }
 0x545   :  { %v6297_v28 = vsel %vm9461_vm1, %v6291_v63, 0 }
 0x546   :  { %v6365_v43 = vand.u32 4294901760, %v6297_v28 }
 0x548   :  { %v6366_v55 = vsub.f32 %v6297_v28, %v6365_v43  ;;  %7646 = vmatmul.mubr.f32.vlgmr.msra.gmra.mrb[10].mxu0 %v6365_v43 }
 0x549   :  { %7667 = vmatprep.mubr.msk.f32.mxu0 %vm9462_vm2, %v8395_v18  ;;  %8106 = vmatpush3.bf16.msra.mxu0 %v8105_v59 }
 0x54a   :  { %v6367_v32 = vand.u32 4294901760, %v6366_v55  ;;  %8107 = vmatprep.subr.bf16.mxu0 %v8398_v51 }
 0x54c   :  { %v6368_v1 = vsub.f32 %v6366_v55, %v6367_v32 }
 0x54d   :  { %8109 = vmatpush3.bf16.msra.mxu0 %v8108_v8 }
 0x54e   :  { %v6369_v3 = vand.u32 4294901760, %v6368_v1  ;;  %8116 = vmatprep.subr.bf16.mxu0 %v8398_v51 }
 0x550   :  { %7621 = vmatmul.mubr.f32.vlgmr.msra.gmra.mrb[8].mxu1 %v6369_v3 }
 0x551   :  { %7624 = vmatpush3.msra.mxu1 %v6380_v34  ;;  %7625 = vmatprep.mubr.msk.f32.mxu1 %vm9462_vm2, %v8395_v18 }
 0x552   :  { %7628 = vmatprep.subr.mxu1 %v8395_v18 }
 0x554   :  { %7626 = vmatmul.mubr.f32.vlgmr.msra.gmra.mrb[10].mxu1 %v6365_v43 }
 0x555   :  { %7629 = vmatpush3.msra.mxu1 %v6377_v20  ;;  %7630 = vmatprep.mubr.msk.f32.mxu1 %vm9462_vm2, %v8395_v18 }
 0x556   :  { %7633 = vmatprep.subr.mxu1 %v8395_v18 }
 0x558   :  { %7631 = vmatmul.mubr.f32.vlgmr.msra.gmra.mrb[12].mxu1 %v6366_v55 }
 0x559   :  { %7634 = vmatpush3.msra.mxu1 %v6300_v30  ;;  %7635 = vmatprep.mubr.msk.f32.mxu1 %vm9462_vm2, %v8395_v18  ;;  %v5834_v30 = vrot.slane %v9191_v42, 3 }
 0x55a   :  { %7638 = vmatprep.subr.mxu1 %v8395_v18 }
 0x55c   :  { %7636 = vmatmul.mubr.f32.vlgmr.msra.gmra.mrb[14].mxu1 %v6367_v32 }
 0x55d   :  { %7639 = vmatpush3.msra.mxu1 %v6378_v22  ;;  %7640 = vmatprep.mubr.msk.f32.mxu1 %vm9462_vm2, %v8395_v18 }
 0x55e   :  { %8098 = vmatprep.subr.bf16.mxu1 %v8398_v51 }
 0x560   :  { %7641 = vmatmul.mubr.f32.vlgmr.msra.gmra.mrb[16].mxu1 %v6365_v43 }
 0x561   :  { %7656 = vmatprep.mubr.msk.f32.mxu1 %vm9462_vm2, %v8395_v18  ;;  %8100 = vmatpush3.bf16.msra.mxu1 %v8099_v4 }
 0x562   :  { %8101 = vmatprep.subr.bf16.mxu1 %v8398_v51 }
 0x565   :  { %8103 = vmatpush3.bf16.msra.mxu1 %v8102_v38 }
 0x566   :  { %8110 = vmatprep.subr.bf16.mxu1 %v8398_v51 }
 0x59b   :  { %v5825_v45 = vpop.permute.xlu0 %5824 }
 0x59c   :  { %v5827_v2 = vadd.f32 %v5825_v45, %v9348_v60 }
 0x59e   :  { %5829 = vrot.lane.b32.xlu0 %v5827_v2, %s8394_s20 }
 0x610   :  { %v5830_v24 = vpop.permute.xlu0 %5829 }
 0x611   :  { %v5832_v41 = vadd.f32 %v5830_v24, %v5827_v2 }
 0x613   :  { %v5836_v10 = vadd.f32 %v5834_v30, %v5832_v41 }
 0x615   :  { %v5837_v54 = vmax.f32 %v5836_v10, 0.0 }
 0x617   :  { %v6746_v27 = vsel %vm9463_vm3, %v5837_v54, 0 }
 0x618   :  { %v6817_v53 = vand.u32 4294901760, %v6746_v27 }
 0x61a   :  { %v6818_v17 = vsub.f32 %v6746_v27, %v6817_v53  ;;  %7668 = vmatmul.mubr.f32.vlgmr.msra.gmra.mrb[12].mxu0 %v6817_v53 }
 0x61b   :  { %8118 = vmatpush3.bf16.msra.mxu0 %v8099_v4  ;;  %7689 = vmatprep.mubr.msk.f32.mxu0 %vm9462_vm2, %v8395_v18  ;;  %v6741_v40 = vpop.f32.mrb[10].mxu0 }
 0x61c   :  { %8119 = vmatprep.subr.bf16.mxu0 %v8398_v51  ;;  %v6819_v19 = vand.u32 4294901760, %v6818_v17  ;;  %v7647_v35 = vpop.f32.mrb[11].mxu0 }
 0x61e   :  { %v6820_v60 = vsub.f32 %v6818_v17, %v6819_v19 }
 0x61f   :  { %8121 = vmatpush3.bf16.msra.mxu0 %v8102_v38 }
 0x620   :  { %8128 = vmatprep.subr.bf16.mxu0 %v8398_v51  ;;  %v6821_v33 = vand.u32 4294901760, %v6820_v60 }
 0x622   :  { %7690 = vmatmul.mubr.f32.vlgmr.msra.gmra.mrb[14].mxu0 %v6819_v19  ;;  %7657 = vmatmul.mubr.f32.vlgmr.msra.gmra.mrb[18].mxu1 %v6821_v33 }
 0x623   :  { %8112 = vmatpush3.bf16.msra.mxu1 %v8111_v21  ;;  %8130 = vmatpush3.bf16.msra.mxu0 %v8099_v4  ;;  %v6371_v7 = vpop.f32.mrb[8].mxu1 }
 0x624   :  { %8113 = vmatprep.subr.bf16.mxu1 %v8398_v51  ;;  %8131 = vmatprep.subr.bf16.mxu0 %v8398_v51  ;;  %v7622_v52 = vpop.f32.mrb[9].mxu1 }
 0x625   :  { %7678 = vmatprep.mubr.msk.f32.mxu1 %vm9462_vm2, %v8395_v18  ;;  %7711 = vmatprep.mubr.msk.f32.mxu0 %vm9462_vm2, %v8395_v18 }
 0x627   :  { %8115 = vmatpush3.bf16.msra.mxu1 %v8114_v62  ;;  %8133 = vmatpush3.bf16.msra.mxu0 %v8102_v38  ;;  %v6447_v20 = vpop.f32.mrb[10].mxu1 }
 0x628   :  { %8122 = vmatprep.subr.bf16.mxu1 %v8398_v51  ;;  %v6448_v57 = vadd.f32 %v6447_v20, %v6371_v7  ;;  %v7627_v63 = vpop.f32.mrb[11].mxu1 }
 0x62a   :  { %7679 = vmatmul.mubr.f32.vlgmr.msra.gmra.mrb[20].mxu1 %v6818_v17  ;;  %7712 = vmatmul.mubr.f32.vlgmr.msra.gmra.mrb[16].mxu0 %v6817_v53 }
 0x62b   :  { %8124 = vmatpush3.bf16.msra.mxu1 %v8123_v25  ;;  %7700 = vmatprep.mubr.msk.f32.mxu1 %vm9462_vm2, %v8395_v18  ;;  %v6521_v28 = vpop.f32.mrb[12].mxu1 }
 0x62c   :  { %8125 = vmatprep.subr.bf16.mxu1 %v8398_v51  ;;  %v6522_v22 = vadd.f32 %v6521_v28, %v6448_v57  ;;  %v7632_v43 = vpop.f32.mrb[13].mxu1 }
 0x62f   :  { %8127 = vmatpush3.bf16.msra.mxu1 %v8126_v13  ;;  %v6595_v55 = vpop.f32.mrb[14].mxu1 }
 0x630   :  { %v6596_v0 = vadd.f32 %v6595_v55, %v6522_v22  ;;  %v7637_v32 = vpop.f32.mrb[15].mxu1 }
 0x632   :  { %7701 = vmatmul.mubr.f32.vlgmr.msra.gmra.mrb[22].mxu1 %v6817_v53 }
 0x633   :  { %v6669_v1 = vpop.f32.mrb[16].mxu1 }
 0x634   :  { %v6670_v34 = vadd.f32 %v6669_v1, %v6596_v0  ;;  %v7642_v3 = vpop.f32.mrb[17].mxu1 }
 0x636   :  { %v6742_v5 = vadd.f32 %v6741_v40, %v6670_v34 }
 0x6ed   :  { %v6914_v12 = vpop.f32.mrb[12].mxu0 }
 0x6ee   :  { %v7669_v11 = vpop.f32.mrb[13].mxu0 }
 0x6f5   :  { %v7071_v39 = vpop.f32.mrb[14].mxu0  ;;  %v6823_v56 = vpop.f32.mrb[18].mxu1 }
 0x6f6   :  { %v6824_v48 = vadd.f32 %v6823_v56, %v6742_v5  ;;  %v7691_v6 = vpop.f32.mrb[15].mxu0  ;;  %v7658_v18 = vpop.f32.mrb[19].mxu1 }
 0x6f8   :  { %v6915_v23 = vadd.f32 %v6914_v12, %v6824_v48 }
 0x6fd   :  { %v6994_v31 = vpop.f32.mrb[20].mxu1  ;;  %v7229_v61 = vpop.f32.mrb[16].mxu0 }
 0x6fe   :  { %v6995_v37 = vadd.f32 %v6994_v31, %v6915_v23  ;;  %v7680_v15 = vpop.f32.mrb[21].mxu1  ;;  %v7713_v49 = vpop.f32.mrb[17].mxu0 }
 0x700   :  { %v7072_v9 = vadd.f32 %v7071_v39, %v6995_v37 }
 0x705   :  { %v7154_v26 = vpop.f32.mrb[22].mxu1 }
 0x706   :  { %v7155_v58 = vadd.f32 %v7154_v26, %v7072_v9  ;;  %v7702_v44 = vpop.f32.mrb[23].mxu1 }
 0x708   :  { %v7230_v47 = vadd.f32 %v7229_v61, %v7155_v58 }
 0x70a   :  { %v7235_v16 = vadd.f32 %v7233_v50, %v7230_v47 }
 0x70c   :  { %v7237_v59 = vsel %vm7236_vm10, %v7235_v16, -inf }
 0x70d   :  { %7238 = vmax.xlane.f32.xlu1 %v7237_v59 }
 0x79a   :  { %v7239_v29 = vpop.xlane.xlu1 %7238 }
 0x79b   :  { %v7240_v14 = vsub.f32 %v7235_v16, %v7239_v29 }
 0x79d   :  { %v7241_v51 = vmul.f32 1.442695, %v7240_v14 }
 0x79f   :  { %8337 = vpow2.f32 %v7241_v51 }
 0x7a9   :  { %v8338_v46 = vpop.eup %8337 }
 0x7aa   :  { %v7243_v36 = vsel %vm7236_vm10, %v8338_v46, 0.0 }
 0x7ab   :  { %7244 = vadd.xlane.f32.xlu0 %v7243_v36 }
 0x838   :  { %v7245_v8 = vpop.xlane.xlu0 %7244 }
 0x839   :  { %8339 = vrcp.f32 %v7245_v8 }
 0x843   :  { %v8340_v4 = vpop.eup %8339 }
 0x844   :  { %v7247_v42 = vmul.f32 %v8340_v4, %v8338_v46 }
 0x846   :  { %7248 = vst.msk [vmem:[#allocation5] sm:$0x1] %vm7236_vm10, %v7247_v42 }
 0x847   :  { %8375 = shalt.err (!%p8372_p12)
}
 0x848   :  { %s8376_s20 = scalar_lea.hbm %s9419_s5, 16 }
 0x849   :  { %p8377_p13 = scmp.ne.s32.totalorder %s9419_s5, %s8376_s20  ;;  %p8380_p0 = scmp.lt.u32.totalorder %s8376_s20, %s9419_s5 }
 0x84b   :  { %p8382_p1 = pnand %p8380_p0, %p8377_p13 }
 0x84d   :  { %8385 = shalt.err (!%p8382_p1)
}
 0x84e   :  { %7258 = dma.vmem_to_hbm [thread:$0]  %s7256_s15, 16, %s9419_s5, [#allocation4]  }
 0x84f   :  { %8388 = dma.done.wait [#allocation4], 16  }
 0x850   :  { %8389 = vsyncadd [#allocation4], 4294967280 }
 0x851   :  { %7262 = vsyncpa [#allocation3], 1 }
 0x852   :  { %7263 = vsyncpa [#allocation4], 1 }

</bundles_post_ra>
